<compile_context>
chip_gen: v5e
topology: v5e:2x2
jax: 0.10.0
libtpu: 0.0.40
codegen_flags: <defaults>
</compile_context>

<pallas_src>
import functools

import jax
import jax.numpy as jnp
import numpy as np
from jax.experimental import pallas as pl
from jax.experimental.pallas import tpu as pltpu

_LANE = 128
_SUBLANE_F32 = 8


def _round_up(x, m):
    return ((x + m - 1) // m) * m


def _sublane_multiple(dtype):
    # Sub-32-bit dtypes pack along sublanes: 8 rows for 4-byte, 16 for 2-byte.
    return _SUBLANE_F32 * max(1, 4 // jnp.dtype(dtype).itemsize)


def _padded_tile_bytes(rows, cols, dtype):
    """VMEM bytes of a (rows, cols) tile after (sublane, 128-lane) padding."""
    itemsize = jnp.dtype(dtype).itemsize
    return (_round_up(max(rows, 1), _sublane_multiple(dtype))
            * _round_up(max(cols, 1), _LANE) * itemsize)


def _est_vmem_bytes(g, lq, lk, dk, dv, dtype):
    """Padding-aware VMEM estimate for one grid step with a head-group of g."""
    # Double-buffered lane-dense 2-D pipeline blocks (q, k, v, out).
    slabs = (_padded_tile_bytes(g, lq * dk, dtype)
             + _padded_tile_bytes(g, lk * dk, dtype)
             + _padded_tile_bytes(g, lk * dv, dtype)
             + _padded_tile_bytes(g, lq * dv, dtype))
    pipeline = 2 * slabs
    # In-kernel materialized per-head intermediates (3-D views + f32 softmax).
    per_head = (_padded_tile_bytes(lq, dk, dtype)                # q view
                + _padded_tile_bytes(lk, dk, dtype)              # k view
                + _padded_tile_bytes(lk, dv, dtype)              # v view
                + 2 * _padded_tile_bytes(lq, lk, jnp.float32)    # scores, p
                + _padded_tile_bytes(lq, dv, jnp.float32))       # ctx
    return pipeline + g * per_head


def _pick_group_size(bh, lq, lk, dk, dv, dtype, budget_bytes, g_cap):
    """Largest divisor of bh (<= g_cap) whose *padded* footprint fits the budget.

    Prefers sublane-aligned group sizes (multiple of 8, or the full bh) so the
    block's second-to-last dim tiles cleanly.
    """
    candidates = [g for g in range(min(bh, max(g_cap, 1)), 0, -1) if bh % g == 0]
    aligned = [g for g in candidates if g % _SUBLANE_F32 == 0 or g == bh]
    for pool in (aligned, candidates):
        for g in pool:
            if _est_vmem_bytes(g, lq, lk, dk, dv, dtype) <= budget_bytes:
                return g
    return 1


def _sdpa_kernel(q_ref, k_ref, v_ref, o_ref, *, scale, g, lq, lk, dk, dv):
    # Lane-dense 2-D slabs -> per-head 3-D views.
    q = q_ref[...].reshape(g, lq, dk)
    k = k_ref[...].reshape(g, lk, dk)
    v = v_ref[...].reshape(g, lk, dv)

    # Fold 1/sqrt(d_k) into Q (O(Lq*dk) VPU work instead of O(Lq*Lk) on scores).
    q = q * jnp.asarray(scale, dtype=q.dtype)

    # scores = Q @ K^T, contracting the last dims directly (no materialized
    # transpose); batched over the head-group axis; f32 MXU accumulation.
    scores = jnp.einsum("gqd,gkd->gqk", q, k, preferred_element_type=jnp.float32)

    # Numerically stable softmax kept in f32 (v5e VPU/EUP have no bf16 path).
    m = jnp.max(scores, axis=-1, keepdims=True)
    p = jnp.exp(scores - m)
    denom = jnp.sum(p, axis=-1, keepdims=True)

    # context = softmax(scores) @ V with normalization deferred past the second
    # matmul: one EUP approximate reciprocal + broadcast multiply on (g,Lq,dv)
    # instead of a divide on (g,Lq,Lk).
    ctx = jnp.einsum("gqk,gkd->gqd", p.astype(v.dtype), v,
                     preferred_element_type=jnp.float32)
    ctx = ctx * pl.reciprocal(denom, approx=True)

    # Lane-dense (last dim = Lq*dv) unmasked store.
    o_ref[...] = ctx.astype(o_ref.dtype).reshape(g, lq * dv)


def scaled_dot_product_attention(Q, K, V, d_k, *, group_size=None,
                                 vmem_budget_bytes=None):
    """Q: [B,H,Lq,dk], K: [B,H,Lk,dk], V: [B,H,Lk,dv] -> [B,H,Lq,dv]."""
    B, H, Lq, dk = Q.shape
    _, _, Lk, _ = K.shape
    dv = V.shape[-1]
    scale = 1.0 / float(np.sqrt(d_k))

    BH = B * H
    # Free, contiguous reshapes to lane-dense slabs (last dims Lq*dk etc.).
    q2 = Q.reshape(BH, Lq * dk)
    k2 = K.reshape(BH, Lk * dk)
    v2 = V.reshape(BH, Lk * dv)

    # Per-generation VMEM capacity (v5e/v6e: 128 MiB, v7x: 64 MiB per core);
    # fall back to the most conservative value if the query is unavailable.
    vmem_cap = 64 << 20
    try:
        info = pltpu.get_tpu_info()
        cap = int(getattr(info, "vmem_capacity_bytes", 0) or 0)
        if cap > 0:
            vmem_cap = cap
    except Exception:
        pass
    if vmem_budget_bytes is None:
        vmem_budget_bytes = vmem_cap // 2  # ~64 MiB on v5e/v6e, ~32 MiB on v7x

    if group_size is None:
        # Keep >= 2 grid steps so dimension_semantics=("parallel",) can shard
        # the BH axis across both v7x TensorCores (harmless on v5e/v6e).
        g_cap = max(1, BH // 2)
        group_size = _pick_group_size(BH, Lq, Lk, dk, dv, Q.dtype,
                                      vmem_budget_bytes, g_cap)
    assert BH % group_size == 0, "group_size must divide batch*heads"
    G = group_size
    grid = (BH // G,)

    # Explicit scoped-VMEM limit matched to the padded estimate (with headroom),
    # so growing G never trips the 16/32 MiB scoped defaults.
    est = _est_vmem_bytes(G, Lq, Lk, dk, dv, Q.dtype)
    vmem_limit = int(min(vmem_cap, max(2 * est + (4 << 20), 16 << 20)))

    kernel = functools.partial(_sdpa_kernel, scale=scale, g=G,
                               lq=Lq, lk=Lk, dk=dk, dv=dv)

    out = pl.pallas_call(
        kernel,
        out_shape=jax.ShapeDtypeStruct((BH, Lq * dv), Q.dtype),
        grid_spec=pltpu.PrefetchScalarGridSpec(
            num_scalar_prefetch=0,
            grid=grid,
            in_specs=[
                pl.BlockSpec((G, Lq * dk), lambda i: (i, 0)),
                pl.BlockSpec((G, Lk * dk), lambda i: (i, 0)),
                pl.BlockSpec((G, Lk * dv), lambda i: (i, 0)),
            ],
            out_specs=pl.BlockSpec((G, Lq * dv), lambda i: (i, 0)),
        ),
        compiler_params=pltpu.CompilerParams(
            dimension_semantics=("parallel",),
            vmem_limit_bytes=vmem_limit,
        ),
    )(q2, k2, v2)

    return out.reshape(B, H, Lq, dv)


def _reference_sdpa(Q, K, V, d_k):
    scores = jnp.matmul(Q, jnp.swapaxes(K, -1, -2)) / np.sqrt(d_k)
    attn = jax.nn.softmax(scores, axis=-1)
    return jnp.matmul(attn, V)


if __name__ == "__main__":
    # Module __init__: n_head = 16, d_k is a constructor arg.
    batch, n_head, seq_len, d_k, d_v = 2, 16, 8, 32, 32

    key = jax.random.PRNGKey(0)
    kq, kk, kv = jax.random.split(key, 3)
    Q = jax.random.normal(kq, (batch, n_head, seq_len, d_k), dtype=jnp.float32)
    K = jax.random.normal(kk, (batch, n_head, seq_len, d_k), dtype=jnp.float32)
    V = jax.random.normal(kv, (batch, n_head, seq_len, d_v), dtype=jnp.float32)

    ctx = scaled_dot_product_attention(Q, K, V, d_k)
    ctx = jax.block_until_ready(ctx)

    ref = _reference_sdpa(Q, K, V, d_k)
    # Tolerance accounts for the EUP approximate reciprocal used for the
    # deferred softmax normalization (~1e-3 relative; use approx=False if
    # tighter numerics are required downstream).
    np.testing.assert_allclose(np.asarray(ctx), np.asarray(ref), rtol=2e-3, atol=2e-3)

    print("KERNEL_OK")
</pallas_src>

<mosaic_0001>
module attributes {stable_mosaic.version = 11 : i64} {
  func.func @_sdpa_kernel(%arg0: i32, %arg1: memref<16x256xf32, #tpu.memory_space<vmem>>, %arg2: memref<16x256xf32, #tpu.memory_space<vmem>>, %arg3: memref<16x256xf32, #tpu.memory_space<vmem>>, %arg4: memref<16x256xf32, #tpu.memory_space<vmem>>) attributes {dimension_semantics = [#tpu.dimension_semantics<parallel>], iteration_bounds = array<i64: 2>, scalar_prefetch = 0 : i64, scratch_operands = 0 : i64, tpu.core_type = #tpu.core_type<tc>, window_params = [{transform_indices = @transform_0, window_bounds = array<i64: 16, 256>}, {transform_indices = @transform_1, window_bounds = array<i64: 16, 256>}, {transform_indices = @transform_2, window_bounds = array<i64: 16, 256>}, {transform_indices = @transform_3, window_bounds = array<i64: 16, 256>}]} {
    %c0 = arith.constant 0 : index
    %c0_0 = arith.constant 0 : index
    %0 = vector.load %arg1[%c0, %c0_0] : memref<16x256xf32, #tpu.memory_space<vmem>>, vector<16x256xf32>
    %1 = vector.shape_cast %0 : vector<16x256xf32> to vector<16x8x32xf32>
    %c0_1 = arith.constant 0 : index
    %c0_2 = arith.constant 0 : index
    %2 = vector.load %arg2[%c0_1, %c0_2] : memref<16x256xf32, #tpu.memory_space<vmem>>, vector<16x256xf32>
    %3 = vector.shape_cast %2 : vector<16x256xf32> to vector<16x8x32xf32>
    %c0_3 = arith.constant 0 : index
    %c0_4 = arith.constant 0 : index
    %4 = vector.load %arg3[%c0_3, %c0_4] : memref<16x256xf32, #tpu.memory_space<vmem>>, vector<16x256xf32>
    %5 = vector.shape_cast %4 : vector<16x256xf32> to vector<16x8x32xf32>
    %cst = arith.constant 0.176776692 : f32
    %6 = vector.broadcast %cst : f32 to vector<16x8x32xf32>
    %7 = arith.mulf %1, %6 : vector<16x8x32xf32>
    "tpu.trace_start"() <{level = 10 : i32, message = "gqd,gkd->gqk"}> : () -> ()
    %cst_5 = arith.constant dense<0.000000e+00> : vector<16x8x8xf32>
    %8 = tpu.matmul %7, %3, %cst_5 {dimension_numbers = #tpu.dot_dimension_numbers<[2], [2], [1], [1], [0, 0, 0, 1, 1, 1], [0], [0]>} : vector<16x8x32xf32>, vector<16x8x32xf32>, vector<16x8x8xf32> -> vector<16x8x8xf32>
    "tpu.trace_stop"() : () -> ()
    %cst_6 = arith.constant dense<0xFF800000> : vector<16x8xf32>
    %9 = vector.multi_reduction <maximumf>, %8, %cst_6 [2] : vector<16x8x8xf32> to vector<16x8xf32>
    %10 = vector.shape_cast %9 : vector<16x8xf32> to vector<16x8x1xf32>
    %11 = vector.broadcast %10 : vector<16x8x1xf32> to vector<16x8x8xf32>
    %12 = arith.subf %8, %11 : vector<16x8x8xf32>
    %13 = math.exp %12 : vector<16x8x8xf32>
    %cst_7 = arith.constant dense<0.000000e+00> : vector<16x8xf32>
    %14 = vector.multi_reduction <add>, %13, %cst_7 [2] : vector<16x8x8xf32> to vector<16x8xf32>
    %15 = vector.shape_cast %14 : vector<16x8xf32> to vector<16x8x1xf32>
    "tpu.trace_start"() <{level = 10 : i32, message = "gqk,gkd->gqd"}> : () -> ()
    %cst_8 = arith.constant dense<0.000000e+00> : vector<16x8x32xf32>
    %16 = tpu.matmul %13, %5, %cst_8 {dimension_numbers = #tpu.dot_dimension_numbers<[2], [1], [1], [2], [0, 0, 0, 1, 1, 2], [0], [0]>} : vector<16x8x8xf32>, vector<16x8x32xf32>, vector<16x8x32xf32> -> vector<16x8x32xf32>
    "tpu.trace_stop"() : () -> ()
    %17 = tpu.reciprocal %15 {approx = true} : vector<16x8x1xf32> -> vector<16x8x1xf32>
    %18 = vector.broadcast %17 : vector<16x8x1xf32> to vector<16x8x32xf32>
    %19 = arith.mulf %16, %18 : vector<16x8x32xf32>
    %20 = vector.shape_cast %19 : vector<16x8x32xf32> to vector<16x256xf32>
    %c0_9 = arith.constant 0 : index
    %c0_10 = arith.constant 0 : index
    %21 = vector.load %arg4[%c0_9, %c0_10] : memref<16x256xf32, #tpu.memory_space<vmem>>, vector<16x256xf32>
    tpu.vector_store %arg4[%c0_9, %c0_10], %20 {strides = array<i32>} : memref<16x256xf32, #tpu.memory_space<vmem>>, vector<16x256xf32>,
    return
  }
  func.func @transform_0(%arg0: i32) -> (i32, i32) {
    %c0_i32 = arith.constant 0 : i32
    %c0_i32_0 = arith.constant 0 : i32
    return %arg0, %c0_i32 : i32, i32
  }
  func.func @transform_1(%arg0: i32) -> (i32, i32) {
    %c0_i32 = arith.constant 0 : i32
    %c0_i32_0 = arith.constant 0 : i32
    return %arg0, %c0_i32 : i32, i32
  }
  func.func @transform_2(%arg0: i32) -> (i32, i32) {
    %c0_i32 = arith.constant 0 : i32
    %c0_i32_0 = arith.constant 0 : i32
    return %arg0, %c0_i32 : i32, i32
  }
  func.func @transform_3(%arg0: i32) -> (i32, i32) {
    %c0_i32 = arith.constant 0 : i32
    %c0_i32_0 = arith.constant 0 : i32
    return %arg0, %c0_i32 : i32, i32
  }
}

</mosaic_0001>

<bundles_post_ra>
// kernel: tpu_custom_call.1
= control target key start
LH: loop header
LB: loop body
LE: loop exit
PB: predicated region body
PF: predicated region fallthrough
CT: control target
= control target key end

     0   :  { %s3865_s0 = inlined_call_operand.hbm [shape: f32[32,256], index: 0, kind: input, shape index: {}]   ;;  %s3866_s1 = inlined_call_operand.hbm [shape: f32[32,256], index: 1, kind: input, shape index: {}]   ;;  %s3867_s2 = inlined_call_operand.hbm [shape: f32[32,256], index: 2, kind: input, shape index: {}]   ;;  %s3868_s3 = inlined_call_operand.hbm [shape: f32[32,256], index: 3, kind: output, shape index: {}]  }
   0x1   :  { %3871 = sst [smem:[#allocation13_spill]] %s3865_s0 }
   0x2   :  { %3872 = sst [smem:[#allocation14_spill]] %s3866_s1 }
   0x3   :  { %8 = vsyncpa [#allocation3], 0 }
   0x4   :  { %10 = vsyncpa [#allocation3 + $0x1], 0 }
   0x5   :  { %11 = vsyncpa [#allocation6], 0 }
   0x6   :  { %13 = vsyncpa [#allocation6 + $0x1], 0 }
   0x7   :  { %14 = vsyncpa [#allocation4], 0 }
   0x8   :  { %16 = vsyncpa [#allocation4 + $0x1], 0  ;;  %s2917_s12 = smov 0   ;;  %s2919_s13 = smov 0  }
   0x9   :  { %s2921_s14 = smov 0   ;;  %s2923_s15 = smov 0  }
   0xa LB: > { %s2938_s16 = sadd.s32 4294967295, %s2886_s15   ;;  %s2485_s17 = sadd.s32 4294967294, %s2886_s15   ;;  %s2886_s15 = sphi %s2923_s15, %s3886_s15   ;;  %s2882_s14 = sphi %s2921_s14, %s3885_s14   ;;  %s2878_s13 = sphi %s2919_s13, %s3884_s13   ;;  %s2874_s12 = sphi %s2917_s12, %s3883_s12  }
   0xb   : > { %s2942_s18 = sadd.s32 1, %s2886_s15   ;;  %s29_s19 = sadd.s32 1, %s2882_s14 }
   0xc   : > { %s26_s20 = ssub.s32 %s2886_s15, %s2942_s18  ;;  %p36_p0 = scmp.ne.s32.totalorder %s2882_s14, %s2878_s13 }
   0xd   : > { %p27_p1 = scmp.eq.s32.totalorder %s26_s20, 0  ;;  %p37_p2 = scmp.eq.s32.totalorder %s2886_s15, 0 }
   0xe   : > { %p42_p3 = scmp.ne.s32.totalorder %s2878_s13, %s2874_s12  ;;  %p43_p4 = scmp.eq.s32.totalorder %s2938_s16, 0 }
   0xf   : > { %s2954_s21 = scalar_select %p27_p1, %s2882_s14, %s29_s19  }
  0x10   : > { %p38_p5 = por %p37_p2, %p36_p0  ;;  %p2956_p6 = por %p43_p4, %p42_p3 }
  0x11   : > { %3873 = sst [smem:[#allocation12_spill]] %s2954_s21  ;;  %p118_p7 = scmp.eq.s32.totalorder %s2938_s16, 1 }
  0x12   : > { %p124_p8 = scmp.eq.s32.totalorder %s2485_s17, 1  ;;  %p2487_p9 = scmp.ge.s32.totalorder %s2886_s15, 2 }
  0x13   : > { %p2589_p10 = scmp.lt.s32.totalorder %s2886_s15, 2  ;;  %p2963_p11 = por %p118_p7, %p36_p0 }
  0x14   : > { %p2967_p12 = por %p124_p8, %p42_p3  ;;  %s144_s25 = sand.u32 1, %s2882_s14  }
  0x15   : > { %s2973_s26 = sshll.u32 %s2886_s15, 5  ;;  %s2977_s27 = sshll.u32 %s144_s25, 5 }
  0x16   : > { %p2979_p13 = pnand %p2589_p10, %p38_p5  ;;  %s167_s29 = sand.u32 1, %s2886_s15  }
  0x17   : > { %s3878_s1 = sld [smem:[#allocation14_spill]]  ;;  %s171_s6 = scalar_lea.vmem [#allocation5], %s2977_s27 }
  0x18   : > { %s180_s7 = sshll.u32 %s171_s6, 4  ;;  %p2500_p0 = scmp.ge.s32.totalorder %s2886_s15, 1  ;;  %s181_s7 = int_to_ptr.vmem [resolvable:$true] %s180_s7 }
  0x19   : > { %s2990_s9 = scalar_lea.sflag [#allocation6], %s167_s29  ;;  %p2730_p2 = pneg %p2979_p13 }
  0x1d   : > { %s177_s5 = scalar_lea.hbm %s3878_s1, %s2973_s26  ;;  %s2733_s20 = scalar_lea.hbm %s3878_s1, 64 }
  0x1e   : > { %s178_s8 = sshll.u32 %s177_s5, 4  ;;  %s179_s8 = int_to_ptr.hbm [resolvable:$true] %s178_s8 }
  0x1f   : > { %s2726_s10 = sshra.s32 %s179_s8, 4  ;;  %s2727_s10 = int_to_ptr.hbm [resolvable:$true] %s2726_s10 }
  0x20   : > { %s2728_s11 = scalar_lea.hbm %s2727_s10, 32  ;;  %p2734_p5 = scmp.lt.s32.totalorder %s2727_s10, %s3878_s1 }
  0x21   : > { %p2729_p1 = scmp.ne.s32.totalorder %s2727_s10, %s2728_s11  ;;  %p2735_p7 = scmp.lt.s32.totalorder %s2733_s20, %s2728_s11 }
  0x23   : > { %p2731_p3 = pnand %p2730_p2, %p2729_p1  ;;  %p2736_p8 = por %p2735_p7, %p2734_p5 }
  0x25   : > { %p2732_p4 = pneg %p2731_p3 }
  0x27   : > { %p2737_p10 = pnand %p2736_p8, %p2732_p4 }
  0x29   : > { %2740 = shalt.err (!%p2737_p10)
}
  0x2a   : > { %s3869_s29 = smov 256   ;;  %s2889_s5 = smov 16  }
  0x2b   : > { %2581 = dma.hbm_to_vmem [thread:$0]  (!%p2979_p13), %s179_s8, 512, %s181_s7, %s2990_s9, %s3869_s29, %s3869_s29, %s2889_s5  }
  0x2c   : > { %p211_p1 = scmp.lt.s32.totalorder %s2886_s15, 3  ;;  %s3879_s0 = sld [smem:[#allocation13_spill]] }
  0x2d   : > { %s148_s20 = scalar_lea.vmem [#allocation2], %s2977_s27  ;;  %s145_s4 = scalar_lea.sflag [#allocation3], %s144_s25 }
  0x2e   : > { %p3016_p3 = pnand %p2500_p0, %p211_p1  ;;  %s157_s30 = sshll.u32 %s148_s20, 4  ;;  %s158_s30 = int_to_ptr.vmem [resolvable:$true] %s157_s30 }
  0x32   : > { %s154_s11 = scalar_lea.hbm %s3879_s0, %s2973_s26  ;;  %s2763_s10 = scalar_lea.hbm %s3879_s0, 64 }
  0x33   : > { %s155_s19 = sshll.u32 %s154_s11, 4  ;;  %s156_s19 = int_to_ptr.hbm [resolvable:$true] %s155_s19 }
  0x34   : > { %s2756_s1 = sshra.s32 %s156_s19, 4  ;;  %s2757_s1 = int_to_ptr.hbm [resolvable:$true] %s2756_s1 }
  0x35   : > { %s2758_s7 = scalar_lea.hbm %s2757_s1, 32  ;;  %p2764_p0 = scmp.lt.s32.totalorder %s2757_s1, %s3879_s0 }
  0x36   : > { %p2759_p4 = scmp.ne.s32.totalorder %s2757_s1, %s2758_s7  ;;  %p2765_p8 = scmp.lt.s32.totalorder %s2763_s10, %s2758_s7 }
  0x38   : > { %p2761_p5 = pnand %p2759_p4, %p2730_p2  ;;  %p2766_p10 = por %p2765_p8, %p2764_p0 }
  0x3a   : > { %p2762_p7 = pneg %p2761_p5 }
  0x3c   : > { %p2767_p1 = pnand %p2766_p10, %p2762_p7 }
  0x3e   : > { %2770 = shalt.err (!%p2767_p1)
}
  0x3f   : > { %s3881_s25 = smov 256   ;;  %s200_s6 = scalar_lea.hbm %s3867_s2, %s2973_s26 }
  0x40   : > { %2578 = dma.hbm_to_vmem [thread:$0]  (!%p2979_p13), %s156_s19, 512, %s158_s30, %s145_s4, %s3881_s25, %s3881_s25, %s2889_s5  }
  0x41   : > { %s194_s21 = scalar_lea.vmem [#allocation7], %s2977_s27  ;;  %s201_s1 = sshll.u32 %s200_s6, 4  ;;  %s202_s1 = int_to_ptr.hbm [resolvable:$true] %s201_s1 }
  0x42   : > { %s203_s29 = sshll.u32 %s194_s21, 4  ;;  %s2786_s7 = sshra.s32 %s202_s1, 4  ;;  %s204_s29 = int_to_ptr.vmem [resolvable:$true] %s203_s29  ;;  %s2787_s7 = int_to_ptr.hbm [resolvable:$true] %s2786_s7 }
  0x43   : > { %s2788_s10 = scalar_lea.hbm %s2787_s7, 32  ;;  %s2793_s19 = scalar_lea.hbm %s3867_s2, 64 }
  0x44   : > { %p2789_p4 = scmp.ne.s32.totalorder %s2787_s7, %s2788_s10  ;;  %p2794_p0 = scmp.lt.s32.totalorder %s2787_s7, %s3867_s2 }
  0x45   : > { %p2795_p8 = scmp.lt.s32.totalorder %s2793_s19, %s2788_s10 }
  0x46   : > { %p2791_p5 = pnand %p2789_p4, %p2730_p2 }
  0x47   : > { %p2796_p10 = por %p2795_p8, %p2794_p0 }
  0x48   : > { %p2792_p7 = pneg %p2791_p5 }
  0x4a   : > { %p2797_p1 = pnand %p2796_p10, %p2792_p7 }
  0x4c   : > { %2800 = shalt.err (!%p2797_p1)
}
  0x4d   : > { %2584 = dma.hbm_to_vmem [thread:$0]  (!%p2979_p13), %s202_s1, 512, %s204_s29, %s2990_s9, %s3881_s25, %s3881_s25, %s2889_s5  }
  0x4e   : > { %215 = sbr.rel (%p3016_p3) target bundleno = 862 (0x35e), region = 32  ;;  %s3060_s0 = sand.u32 (!%p3016_p3), 1, %s2878_s13  }
  0x4f   : > { %s3063_s21 = sshll.u32 (!%p3016_p3), %s3060_s0, 5  ;;  %s218_s26 = scalar_lea.sflag (!%p3016_p3), [#allocation3], %s3060_s0 }
  0x50   : > { %s3067_s27 = scalar_lea.vmem (!%p3016_p3), [#allocation2], %s3063_s21 }
  0x53   : > { %2861 = dma.done.wait (%p2956_p6), %s218_s26, 512  }
  0x54   : > { %2863 = vsyncadd (%p2956_p6), %s218_s26, 4294966784  ;;  %s227_s28 = sand.u32 1, %s2938_s16   ;;  %s231_s5 = scalar_lea.vmem [#allocation5], %s3063_s21 }
  0x55   : > { %s228_s9 = scalar_lea.sflag [#allocation6], %s227_s28 }
  0x56   : > { %2865 = dma.done.wait (%p2956_p6), %s228_s9, 1024  }
  0x57   : > { %2867 = vsyncadd (%p2956_p6), %s228_s9, 4294966272  ;;  %v549_v0 = vld [vmem:[%s231_s5 + $0x8] sm:$0xff]  ;;  %v3079_v1 = vld [vmem:[%s231_s5] sm:$0xff]  ;;  %s2890_s17 = smov 64   ;;  %s2891_s25 = smov 32   ;;  %vm324_vm0 = vcmask 1047556  }
  0x58   : > { %580 = vrot.lane.b32.xlu0 %v549_v0, %s2890_s17  ;;  %560 = vrot.lane.b32.xlu1 %v3079_v1, %s2890_s17  ;;  %v3086_v2 = vld [vmem:[%s3067_s27 + $0x8] sm:$0xff]  ;;  %v3089_v3 = vld [vmem:[%s3067_s27] sm:$0xff]  ;;  %s2892_s22 = smov 96   ;;  %v2893_v11 = vmov 1983009808   ;;  %v618_v20 = vrot.slane %v549_v0, 4 }
  0x59   : > { %586 = vrot.lane.b32.xlu2 %v549_v0, %s2891_s25  ;;  %v3108_v4 = vld [vmem:[%s231_s5 + $0x18] sm:$0xff]  ;;  %v3117_v6 = vld [vmem:[%s231_s5 + $0x10] sm:$0xff]  ;;  %v329_v12 = vunpack.c.l.s4 %v2893_v11  ;;  %v594_v22 = vrot.slane %v3079_v1, 4  ;;  %v2894_v27 = vmov 1934713408   ;;  %v350_v37 = vrot.slane %v3086_v2, 4 }
  0x5a   : > { %v3111_v5 = vld [vmem:[%s3067_s27 + $0x18] sm:$0xff]  ;;  %v3122_v7 = vld [vmem:[%s3067_s27 + $0x10] sm:$0xff]  ;;  %v377_v28 = vunpack.c.l.s4 %v2894_v27  ;;  %v326_v38 = vrot.slane %v3089_v3, 4  ;;  %v706_v43 = vrot.slane %v3117_v6, 4  ;;  %v730_v54 = vrot.slane %v3108_v4, 4  ;;  %s3375_s20 = scalar_lea.vmem [#allocation7], %s3063_s21 }
  0x5b   : > { %v3144_v15 = vunpack.c.0.s8 %v329_v12  ;;  %vm1100_vm1 = vcmask 261120   ;;  %vm1517_vm2 = vcmask 64512   ;;  %vm2336_vm3 = vcmask 523264   ;;  %s274_s8 = scalar_lea.vmem [#allocation8], %s3063_s21  ;;  %s2566_s6 = sshll.u32 %s2938_s16, 5 }
  0x5c   : > { %v3161_v42 = vunpack.c.0.s8 %v377_v28  ;;  %vm2339_vm4 = vcmask 785408   ;;  %s2365_s7 = scalar_lea.hbm %s3868_s3, %s2566_s6  ;;  %s2366_s10 = sshll.u32 %s274_s8, 4  ;;  %s2367_s10 = int_to_ptr.vmem [resolvable:$true] %s2366_s10 }
  0x5d   : > { %s2368_s11 = sshll.u32 %s2365_s7, 4  ;;  %s2353_s16 = scalar_lea.sflag [#allocation4], %s3060_s0  ;;  %s2369_s11 = int_to_ptr.hbm [resolvable:$true] %s2368_s11 }
  0x5e   : > { %s2830_s19 = sshra.s32 %s2369_s11, 4  ;;  %s2836_s26 = scalar_lea.hbm %s3868_s3, 64  ;;  %s2831_s19 = int_to_ptr.hbm [resolvable:$true] %s2830_s19 }
  0x5f   : > { %s2832_s30 = scalar_lea.hbm %s2831_s19, 32  ;;  %p2837_p3 = scmp.lt.s32.totalorder %s2831_s19, %s3868_s3 }
  0x60   : > { %311 = vrot.lane.b32.xlu0 %v3086_v2, %s2890_s17  ;;  %291 = vrot.lane.b32.xlu1 %v3089_v3, %s2890_s17  ;;  %p2833_p6 = scmp.ne.s32.totalorder %s2831_s19, %s2832_s30  ;;  %p2838_p4 = scmp.lt.s32.totalorder %s2836_s26, %s2832_s30 }
  0x61   : > { %317 = vrot.lane.b32.xlu2 %v3086_v2, %s2891_s25 }
  0x62   : > { %p2834_p13 = pnand %p2833_p6, %p2963_p11  ;;  %p2839_p5 = por %p2838_p4, %p2837_p3 }
  0x64   : > { %p2835_p2 = pneg %p2834_p13 }
  0x66   : > { %p2840_p7 = pnand %p2839_p5, %p2835_p2 }
  0x68   : > { %566 = vrot.lane.b32.xlu0 %v3079_v1, %s2891_s25  ;;  %297 = vrot.lane.b32.xlu1 %v3089_v3, %s2891_s25 }
  0x69   : > { %574 = vrot.lane.b32.xlu2 %v549_v0, %s2892_s22 }
  0x70   : > { %305 = vrot.lane.b32.xlu0 %v3086_v2, %s2892_s22  ;;  %554 = vrot.lane.b32.xlu1 %v3079_v1, %s2892_s22 }
  0x71   : > { %285 = vrot.lane.b32.xlu2 %v3089_v3, %s2892_s22 }
  0x78   : > { %582 = vrot.lane.b32.xlu0 %v3108_v4, %s2890_s17  ;;  %313 = vrot.lane.b32.xlu1 %v3111_v5, %s2890_s17 }
  0x79   : > { %562 = vrot.lane.b32.xlu2 %v3117_v6, %s2890_s17 }
  0x80   : > { %293 = vrot.lane.b32.xlu0 %v3122_v7, %s2890_s17  ;;  %588 = vrot.lane.b32.xlu1 %v3108_v4, %s2891_s25 }
  0x81   : > { %319 = vrot.lane.b32.xlu2 %v3111_v5, %s2891_s25 }
  0x88   : > { %568 = vrot.lane.b32.xlu0 %v3117_v6, %s2891_s25  ;;  %299 = vrot.lane.b32.xlu1 %v3122_v7, %s2891_s25 }
  0x89   : > { %576 = vrot.lane.b32.xlu2 %v3108_v4, %s2892_s22 }
  0x90   : > { %307 = vrot.lane.b32.xlu0 %v3111_v5, %s2892_s22  ;;  %556 = vrot.lane.b32.xlu1 %v3117_v6, %s2892_s22 }
  0x91   : > { %287 = vrot.lane.b32.xlu2 %v3122_v7, %s2892_s22 }
  0xb3   : > { %v587_v8 = vpop.permute.xlu2 %586 }
  0xb4   : > { %v628_v14 = vrot.slane %v587_v8, 4 }
  0xbb   : > { %v3142_v9 = vpop.permute.xlu2 %317 }
  0xbc   : > { %v360_v48 = vrot.slane %v3142_v9, 4 }
  0xc3   : > { %v575_v10 = vpop.permute.xlu2 %574 }
  0xc4   : > { %v630_v13 = vrot.slane %v575_v10, 4  ;;  %v629_v23 = vsel %vm324_vm0, %v628_v14, %v575_v10 }
  0xc5   : > { %v635_v29 = vperm.slane %v629_v23, %v3144_v15  ;;  %v462_v23 = vrot.slane %v3111_v5, 4 }
  0xc6   : > { %v631_v18 = vsel %vm324_vm0, %v587_v8, %v630_v13 }
  0xc7   : > { %v639_v24 = vperm.slane %v631_v18, %v3144_v15  ;;  %v664_v44 = vrot.slane %v635_v29, 4 }
  0xc9   : > { %v676_v33 = vrot.slane %v639_v24, 4 }
  0xca   : > { %v581_v16 = vpop.permute.xlu0 %580  ;;  %v561_v17 = vpop.permute.xlu1 %560 }
  0xcb   : > { %v616_v19 = vrot.slane %v581_v16, 4  ;;  %v286_v21 = vpop.permute.xlu2 %285  ;;  %v619_v26 = vsel %vm324_vm0, %v581_v16, %v618_v20  ;;  %v592_v31 = vrot.slane %v561_v17, 4  ;;  %v595_v32 = vsel %vm324_vm0, %v561_v17, %v594_v22 }
  0xcc   : > { %v627_v34 = vperm.slane %v619_v26, %v3144_v15  ;;  %v3159_v40 = vperm.slane %v595_v32, %v3144_v15  ;;  %v338_v53 = vrot.slane %v286_v21, 4 }
  0xcd   : > { %v617_v25 = vsel %vm324_vm0, %v616_v19, %v549_v0  ;;  %v593_v46 = vsel %vm324_vm0, %v592_v31, %v3079_v1 }
  0xce   : > { %v623_v30 = vperm.slane %v617_v25, %v3144_v15  ;;  %v677_v49 = vsel %vm324_vm0, %v676_v33, %v627_v34  ;;  %v678_v50 = vrot.slane %v627_v34, 4  ;;  %v3172_v55 = vperm.slane %v593_v46, %v3144_v15 }
  0xcf   : > { %v654_v56 = vrot.slane %v3159_v40, 4  ;;  %v3183_v62 = vperm.slane %v677_v49, %v3161_v42  ;;  %v438_v46 = vrot.slane %v3122_v7, 4 }
  0xd0   : > { %v666_v45 = vrot.slane %v623_v30, 4  ;;  %v665_v61 = vsel %vm324_vm0, %v664_v44, %v623_v30  ;;  %v679_v10 = vsel %vm324_vm0, %v639_v24, %v678_v50  ;;  %v642_v20 = vrot.slane %v3172_v55, 4 }
  0xd1   : > { %v3203_v19 = vperm.slane %v665_v61, %v3161_v42  ;;  %v696_v24 = vrot.slane %v3183_v62, 4  ;;  %v3213_v28 = vperm.slane %v679_v10, %v3161_v42 }
  0xd2   : > { %v312_v35 = vpop.permute.xlu0 %311  ;;  %v292_v36 = vpop.permute.xlu1 %291  ;;  %v667_v60 = vsel %vm324_vm0, %v635_v29, %v666_v45 }
  0xd3   : > { %v563_v39 = vpop.permute.xlu2 %562  ;;  %v323_v41 = vrot.slane %v292_v36, 4  ;;  %v348_v47 = vrot.slane %v312_v35, 4  ;;  %v351_v51 = vsel %vm324_vm0, %v312_v35, %v350_v37  ;;  %v327_v52 = vsel %vm324_vm0, %v292_v36, %v326_v38 }
  0xd4   : > { %v707_v58 = vsel %vm324_vm0, %v563_v39, %v706_v43  ;;  %v3186_v63 = vperm.slane %v351_v51, %v3144_v15  ;;  %v335_v0 = vperm.slane %v327_v52, %v3144_v15  ;;  %v3200_v18 = vperm.slane %v667_v60, %v3161_v42 }
  0xd5   : > { %v325_v57 = vsel %vm324_vm0, %v323_v41, %v3089_v3  ;;  %v349_v59 = vsel %vm324_vm0, %v348_v47, %v3086_v2  ;;  %v704_v3 = vrot.slane %v563_v39, 4  ;;  %v3193_v13 = vperm.slane %v707_v58, %v3144_v15 }
  0xd6   : > { %v331_v11 = vperm.slane %v325_v57, %v3144_v15  ;;  %v355_v16 = vperm.slane %v349_v59, %v3144_v15  ;;  %v410_v29 = vrot.slane %v3186_v63, 4  ;;  %v386_v31 = vrot.slane %v335_v0, 4 }
  0xd7   : > { %v705_v27 = vsel %vm324_vm0, %v704_v3, %v3117_v6  ;;  %v766_v32 = vrot.slane %v3193_v13, 4  ;;  %v692_v34 = vrot.slane %v3200_v18, 4  ;;  %v688_v35 = vrot.slane %v3203_v19, 4 }
  0xd8   : > { %v374_v30 = vrot.slane %v331_v11, 4  ;;  %v3221_v6 = vperm.slane %v705_v27, %v3144_v15  ;;  %v700_v44 = vrot.slane %v3213_v28, 4 }
  0xda   : > { %v567_v1 = vpop.permute.xlu0 %566  ;;  %v298_v8 = vpop.permute.xlu1 %297 }
  0xdb   : > { %v336_v2 = vrot.slane %v298_v8, 4  ;;  %v339_v12 = vsel %vm324_vm0, %v298_v8, %v338_v53  ;;  %v3195_v14 = vpop.permute.xlu2 %319  ;;  %v604_v36 = vrot.slane %v567_v1, 4 }
  0xdc   : > { %v347_v17 = vperm.slane %v339_v12, %v3144_v15 }
  0xdd   : > { %v337_v22 = vsel %vm324_vm0, %v336_v2, %v286_v21  ;;  %v398_v21 = vrot.slane %v355_v16, 4 }
  0xde   : > { %v343_v25 = vperm.slane %v337_v22, %v3144_v15  ;;  %v384_v26 = vrot.slane %v347_v17, 4  ;;  %v387_v37 = vsel %vm324_vm0, %v347_v17, %v386_v31  ;;  %v754_v17 = vrot.slane %v3221_v6, 4 }
  0xdf   : > { %v3231_v52 = vperm.slane %v387_v37, %v3161_v42 }
  0xe0   : > { %v372_v33 = vrot.slane %v343_v25, 4  ;;  %v375_v38 = vsel %vm324_vm0, %v343_v25, %v374_v30  ;;  %v385_v39 = vsel %vm324_vm0, %v384_v26, %v335_v0  ;;  %v472_v25 = vrot.slane %v3195_v14, 4 }
  0xe1   : > { %v383_v58 = vperm.slane %v375_v38, %v3161_v42  ;;  %v3237_v59 = vperm.slane %v385_v39, %v3161_v42 }
  0xe2   : > { %v306_v41 = vpop.permute.xlu0 %305  ;;  %v555_v43 = vpop.permute.xlu1 %554  ;;  %v373_v45 = vsel %vm324_vm0, %v372_v33, %v331_v11 }
  0xe3   : > { %v361_v47 = vsel %vm324_vm0, %v360_v48, %v306_v41  ;;  %v362_v49 = vrot.slane %v306_v41, 4  ;;  %v605_v50 = vsel %vm324_vm0, %v604_v36, %v555_v43  ;;  %v606_v51 = vrot.slane %v555_v43, 4  ;;  %v3245_v0 = vpop.permute.xlu2 %576 }
  0xe4   : > { %v367_v53 = vperm.slane %v361_v47, %v3144_v15  ;;  %v611_v57 = vperm.slane %v605_v50, %v3144_v15  ;;  %v3243_v61 = vperm.slane %v373_v45, %v3161_v42  ;;  %v426_v22 = vrot.slane %v383_v58, 4 }
  0xe5   : > { %v363_v60 = vsel %vm324_vm0, %v3142_v9, %v362_v49  ;;  %v607_v48 = vsel %vm324_vm0, %v567_v1, %v606_v51  ;;  %v434_v1 = vrot.slane %v3231_v52, 4  ;;  %v742_v26 = vrot.slane %v3245_v0, 4 }
  0xe6   : > { %v371_v8 = vperm.slane %v363_v60, %v3144_v15  ;;  %v396_v3 = vrot.slane %v367_v53, 4  ;;  %v399_v10 = vsel %vm324_vm0, %v367_v53, %v398_v21  ;;  %v615_v11 = vperm.slane %v607_v48, %v3144_v15 }
  0xe7   : > { %v407_v2 = vperm.slane %v399_v10, %v3161_v42  ;;  %v640_v12 = vrot.slane %v611_v57, 4  ;;  %v643_v9 = vsel %vm324_vm0, %v611_v57, %v642_v20  ;;  %v422_v31 = vrot.slane %v3243_v61, 4 }
  0xe8   : > { %v651_v27 = vperm.slane %v643_v9, %v3161_v42  ;;  %v430_v21 = vrot.slane %v3237_v59, 4  ;;  %v397_v33 = vsel %vm324_vm0, %v396_v3, %v355_v16  ;;  %v408_v36 = vrot.slane %v371_v8, 4 }
  0xe9   : > { %v641_v30 = vsel %vm324_vm0, %v640_v12, %v3172_v55  ;;  %v655_v39 = vsel %vm324_vm0, %v615_v11, %v654_v56  ;;  %v411_v41 = vsel %vm324_vm0, %v371_v8, %v410_v29  ;;  %v424_v45 = vrot.slane %v407_v2, 4 }
  0xea   : > { %v583_v20 = vpop.permute.xlu0 %582  ;;  %v3262_v37 = vpop.permute.xlu1 %313  ;;  %v647_v38 = vperm.slane %v641_v30, %v3161_v42  ;;  %v693_v55 = vsel %vm324_vm0, %v692_v34, %v651_v27  ;;  %v652_v47 = vrot.slane %v615_v11, 4  ;;  %v694_v50 = vrot.slane %v651_v27, 4 }
  0xeb   : > { %v728_v43 = vrot.slane %v583_v20, 4  ;;  %v731_v16 = vsel %vm324_vm0, %v583_v20, %v730_v54  ;;  %2509 = vmatpush.xpose.msk.msra.mxu2 %vm1100_vm1, %v693_v55  ;;  %v403_v51 = vperm.slane %v397_v33, %v3161_v42  ;;  %v463_v29 = vsel %vm324_vm0, %v3262_v37, %v462_v23 }
  0xec   : > { %v689_v49 = vsel %vm324_vm0, %v688_v35, %v647_v38  ;;  %v663_v34 = vperm.slane %v655_v39, %v3161_v42  ;;  %v409_v54 = vsel %vm324_vm0, %v408_v36, %v3186_v63  ;;  %v419_v35 = vperm.slane %v411_v41, %v3161_v42 }
  0xed   : > { %v729_v56 = vsel %vm324_vm0, %v728_v43, %v3108_v4  ;;  %2505 = vmatpush.xpose.msk.msra.mxu0 %vm1100_vm1, %v689_v49  ;;  %v460_v53 = vrot.slane %v3262_v37, 4  ;;  %v695_v57 = vsel %vm324_vm0, %v3200_v18, %v694_v50  ;;  %v3291_v4 = vperm.slane %v731_v16, %v3144_v15 }
  0xee   : > { %2511 = vmatpush.xpose.msk.msra.mxu3 %vm1100_vm1, %v695_v57  ;;  %v701_v23 = vsel %vm324_vm0, %v700_v44, %v663_v34  ;;  %v690_v60 = vrot.slane %v647_v38, 4  ;;  %v425_v48 = vsel %vm324_vm0, %v424_v45, %v383_v58  ;;  %v3297_v8 = vperm.slane %v729_v56, %v3144_v15 }
  0xef   : > { %v3300_v63 = vperm.slane %v463_v29, %v3144_v15  ;;  %2517 = vmatpush.xpose.msk.msrb.mxu2 %vm1100_vm1, %v701_v23  ;;  %v1086_v3 = vmul.f32 0.17677669, %v425_v48  ;;  %v653_v18 = vsel %vm324_vm0, %v652_v47, %v3159_v40  ;;  %v702_v11 = vrot.slane %v663_v34, 4 }
  0xf0   : > { %v691_v10 = vsel %vm324_vm0, %v3203_v19, %v690_v60  ;;  %v659_v44 = vperm.slane %v653_v18, %v3161_v42  ;;  %v427_v58 = vsel %vm324_vm0, %v407_v2, %v426_v22  ;;  %v420_v9 = vrot.slane %v403_v51, 4 }
  0xf1   : > { %2507 = vmatpush.xpose.msk.msra.mxu1 %vm1100_vm1, %v691_v10  ;;  %2510 = vmatmul.msk.f32.vlgmr.msra.gmra.mxu2 %vm1100_vm1, %v1086_v3  ;;  %v1087_v12 = vmul.f32 0.17677669, %v427_v58  ;;  %v423_v27 = vsel %vm324_vm0, %v403_v51, %v422_v31  ;;  %v432_v36 = vrot.slane %v419_v35, 4  ;;  %v703_v19 = vsel %vm324_vm0, %v3213_v28, %v702_v11 }
  0xf2   : > { %v294_v30 = vpop.permute.xlu0 %293  ;;  %v589_v33 = vpop.permute.xlu1 %588  ;;  %v697_v40 = vsel %vm324_vm0, %v696_v24, %v659_v44  ;;  %v698_v20 = vrot.slane %v659_v44, 4  ;;  %v1085_v2 = vmul.f32 0.17677669, %v423_v27  ;;  %2519 = vmatpush.xpose.msk.msrb.mxu3 %vm1100_vm1, %v703_v19  ;;  %v421_v22 = vsel %vm324_vm0, %v420_v9, %v3243_v61 }
  0xf3   : > { %2513 = vmatpush.xpose.msk.msrb.mxu0 %vm1100_vm1, %v697_v40  ;;  %v436_v31 = vrot.slane %v294_v30, 4  ;;  %v439_v37 = vsel %vm324_vm0, %v294_v30, %v438_v46  ;;  %v740_v38 = vrot.slane %v589_v33, 4  ;;  %2512 = vmatmul.msk.f32.vlgmr.msra.gmra.mxu3 %vm1100_vm1, %v1087_v12  ;;  %v1084_v24 = vmul.f32 0.17677669, %v421_v22  ;;  %v288_v61 = vpop.permute.xlu2 %287 }
  0xf4   : > { %v699_v28 = vsel %vm324_vm0, %v3183_v62, %v698_v20  ;;  %2508 = vmatmul.msk.f32.vlgmr.msra.gmra.mxu1 %vm1100_vm1, %v1085_v2  ;;  %v447_v39 = vperm.slane %v439_v37, %v3144_v15  ;;  %v433_v41 = vsel %vm324_vm0, %v432_v36, %v3231_v52  ;;  %v778_v43 = vrot.slane %v3297_v8, 4 }
  0xf5   : > { %v461_v46 = vsel %vm324_vm0, %v460_v53, %v3111_v5  ;;  %2515 = vmatpush.xpose.msk.msrb.mxu1 %vm1100_vm1, %v699_v28  ;;  %v437_v55 = vsel %vm324_vm0, %v436_v31, %v3122_v7  ;;  %v741_v62 = vsel %vm324_vm0, %v740_v38, %v3245_v0  ;;  %v790_v45 = vrot.slane %v3291_v4, 4  ;;  %2506 = vmatmul.msk.f32.vlgmr.msra.gmra.mxu0 %vm1100_vm1, %v1084_v24 }
  0xf6   : > { %v1090_v47 = vmul.f32 0.17677669, %v433_v41  ;;  %v435_v16 = vsel %vm324_vm0, %v419_v35, %v434_v1  ;;  %v743_v5 = vsel %vm324_vm0, %v589_v33, %v742_v26  ;;  %v747_v49 = vperm.slane %v741_v62, %v3144_v15 }
  0xf7   : > { %v751_v7 = vperm.slane %v743_v5, %v3144_v15  ;;  %v415_v50 = vperm.slane %v409_v54, %v3161_v42  ;;  %v450_v51 = vrot.slane %v288_v61, 4  ;;  %v3351_v56 = vperm.slane %v461_v46, %v3144_v15 }
  0xf8   : > { %v522_v29 = vrot.slane %v3300_v63, 4  ;;  %v443_v52 = vperm.slane %v437_v55, %v3144_v15  ;;  %v498_v34 = vrot.slane %v447_v39, 4  ;;  %v1091_v0 = vmul.f32 0.17677669, %v435_v16 }
  0xf9   : > { %2518 = vmatmul.msk.f32.vlgmr.msrb.gmra.mxu2 %vm1100_vm1, %v1090_v47  ;;  %v776_v1 = vrot.slane %v747_v49, 4  ;;  %v779_v26 = vsel %vm324_vm0, %v747_v49, %v778_v43  ;;  %v788_v35 = vrot.slane %v751_v7, 4  ;;  %v791_v23 = vsel %vm324_vm0, %v751_v7, %v790_v45 }
  0xfa   : > { %v569_v53 = vpop.permute.xlu0 %568  ;;  %v300_v57 = vpop.permute.xlu1 %299  ;;  %v3358_v54 = vperm.slane %v779_v26, %v3161_v42  ;;  %v428_v60 = vrot.slane %v415_v50, 4  ;;  %v431_v48 = vsel %vm324_vm0, %v415_v50, %v430_v21  ;;  %v486_v11 = vrot.slane %v443_v52, 4  ;;  %v3378_v21 = vld [vmem:[%s3375_s20] sm:$0xff] }
  0xfb   : > { %v777_v3 = vsel %vm324_vm0, %v776_v1, %v3297_v8  ;;  %v1089_v18 = vmul.f32 0.17677669, %v431_v48  ;;  %v448_v10 = vrot.slane %v300_v57, 4  ;;  %v451_v44 = vsel %vm324_vm0, %v300_v57, %v450_v51  ;;  %2520 = vmatmul.msk.f32.vlgmr.msrb.gmra.mxu3 %vm1100_vm1, %v1091_v0  ;;  %v3381_v8 = vld [vmem:[%s3375_s20 + $0x8] sm:$0xff] }
  0xfc   : > { %v3369_v58 = vperm.slane %v777_v3, %v3161_v42  ;;  %v429_v12 = vsel %vm324_vm0, %v428_v60, %v3237_v59  ;;  %v459_v9 = vperm.slane %v451_v44, %v3144_v15  ;;  %v3386_v33 = vperm.slane %v791_v23, %v3161_v42 }
  0xfd   : > { %v1088_v27 = vmul.f32 0.17677669, %v429_v12  ;;  %2516 = vmatmul.msk.f32.vlgmr.msrb.gmra.mxu1 %vm1100_vm1, %v1089_v18  ;;  %v449_v30 = vsel %vm324_vm0, %v448_v10, %v288_v61  ;;  %v789_v59 = vsel %vm324_vm0, %v788_v35, %v3291_v4  ;;  %v716_v36 = vrot.slane %v569_v53, 4 }
  0xfe   : > { %v455_v40 = vperm.slane %v449_v30, %v3144_v15  ;;  %v496_v19 = vrot.slane %v459_v9, 4  ;;  %v499_v20 = vsel %vm324_vm0, %v459_v9, %v498_v34  ;;  %v510_v2 = vrot.slane %v3351_v56, 4 }
  0xff   : > { %2514 = vmatmul.msk.f32.vlgmr.msrb.gmra.mxu0 %vm1100_vm1, %v1088_v27  ;;  %v804_v22 = vrot.slane %v3358_v54, 4  ;;  %v3396_v31 = vperm.slane %v789_v59, %v3161_v42  ;;  %v2637_v37 = vpack.i.bf16 %v3378_v21, %v3381_v8  ;;  %v800_v28 = vrot.slane %v3369_v58, 4 }
 0x100   : > { %v484_v38 = vrot.slane %v455_v40, 4  ;;  %v487_v4 = vsel %vm324_vm0, %v455_v40, %v486_v11  ;;  %v497_v24 = vsel %vm324_vm0, %v496_v19, %v447_v39  ;;  %v3405_v61 = vperm.slane %v499_v20, %v3161_v42 }
 0x101   : > { %v495_v41 = vperm.slane %v487_v4, %v3161_v42  ;;  %v812_v55 = vrot.slane %v3386_v33, 4  ;;  %2638 = vrot.lane.b32.xlu1 %v2637_v37, %s2891_s25  ;;  %v3415_v16 = vperm.slane %v497_v24, %v3161_v42  ;;  %v808_v7 = vrot.slane %v3396_v31, 4  ;;  %2633 = vrot.lane.b32.xlu0 %v2637_v37, %s2890_s17 }
 0x102   : > { %v308_v43 = vpop.permute.xlu0 %307  ;;  %v557_v46 = vpop.permute.xlu1 %556  ;;  %v485_v62 = vsel %vm324_vm0, %v484_v38, %v443_v52 }
 0x103   : > { %v473_v45 = vsel %vm324_vm0, %v472_v25, %v308_v43  ;;  %v474_v39 = vrot.slane %v308_v43, 4  ;;  %v717_v47 = vsel %vm324_vm0, %v716_v36, %v557_v46  ;;  %v718_v49 = vrot.slane %v557_v46, 4 }
 0x104   : > { %v479_v5 = vperm.slane %v473_v45, %v3144_v15  ;;  %v491_v50 = vperm.slane %v485_v62, %v3161_v42  ;;  %v723_v52 = vperm.slane %v717_v47, %v3144_v15  ;;  %v538_v34 = vrot.slane %v495_v41, 4  ;;  %v3476_v62 = vld [vmem:[%s3375_s20 + $0x18] sm:$0xff] }
 0x105   : > { %v475_v51 = vsel %vm324_vm0, %v3195_v14, %v474_v39  ;;  %v719_v35 = vsel %vm324_vm0, %v569_v53, %v718_v49  ;;  %v546_v39 = vrot.slane %v3405_v61, 4 }
 0x106   : > { %v483_v25 = vperm.slane %v475_v51, %v3144_v15  ;;  %v508_v0 = vrot.slane %v479_v5, 4  ;;  %v511_v1 = vsel %vm324_vm0, %v479_v5, %v510_v2  ;;  %v752_v57 = vrot.slane %v723_v52, 4 }
 0x107   : > { %v519_v26 = vperm.slane %v511_v1, %v3161_v42  ;;  %v755_v23 = vsel %vm324_vm0, %v723_v52, %v754_v17  ;;  %v727_v3 = vperm.slane %v719_v35, %v3144_v15  ;;  %v534_v18 = vrot.slane %v491_v50, 4 }
 0x108   : > { %v509_v14 = vsel %vm324_vm0, %v508_v0, %v3351_v56  ;;  %v520_v60 = vrot.slane %v483_v25, 4  ;;  %v523_v48 = vsel %vm324_vm0, %v483_v25, %v522_v29  ;;  %v753_v44 = vsel %vm324_vm0, %v752_v57, %v3221_v6 }
 0x109   : > { %v515_v53 = vperm.slane %v509_v14, %v3161_v42  ;;  %v536_v10 = vrot.slane %v519_v26, 4  ;;  %v763_v11 = vperm.slane %v755_v23, %v3161_v42  ;;  %v764_v56 = vrot.slane %v727_v3, 4  ;;  %2643 = vrot.lane.b32.xlu1 %v2637_v37, %s2892_s22 }
 0x10a   : > { %v521_v17 = vsel %vm324_vm0, %v520_v60, %v3300_v63  ;;  %v759_v12 = vperm.slane %v753_v44, %v3161_v42  ;;  %v531_v9 = vperm.slane %v523_v48, %v3161_v42  ;;  %v767_v30 = vsel %vm324_vm0, %v727_v3, %v766_v32 }
 0x10b   : > { %v527_v29 = vperm.slane %v521_v17, %v3161_v42  ;;  %v532_v27 = vrot.slane %v515_v53, 4  ;;  %v805_v6 = vsel %vm324_vm0, %v804_v22, %v763_v11  ;;  %v806_v59 = vrot.slane %v763_v11, 4 }
 0x10c   : > { %v801_v63 = vsel %vm324_vm0, %v800_v28, %v759_v12  ;;  %v775_v36 = vperm.slane %v767_v30, %v3161_v42  ;;  %2525 = vmatpush.xpose.msk.msra.mxu2 %vm1100_vm1, %v805_v6  ;;  %v802_v40 = vrot.slane %v759_v12, 4  ;;  %v537_v19 = vsel %vm324_vm0, %v536_v10, %v495_v41 }
 0x10d   : > { %2521 = vmatpush.xpose.msk.msra.mxu0 %vm1100_vm1, %v801_v63  ;;  %v765_v20 = vsel %vm324_vm0, %v764_v56, %v3193_v13  ;;  %v539_v2 = vsel %vm324_vm0, %v519_v26, %v538_v34  ;;  %v807_v32 = vsel %vm324_vm0, %v3358_v54, %v806_v59  ;;  %v1094_v37 = vmul.f32 0.17677669, %v537_v19 }
 0x10e   : > { %v813_v22 = vsel %vm324_vm0, %v812_v55, %v775_v36  ;;  %v771_v38 = vperm.slane %v765_v20, %v3161_v42  ;;  %v544_v4 = vrot.slane %v531_v9, 4  ;;  %2527 = vmatpush.xpose.msk.msra.mxu3 %vm1100_vm1, %v807_v32  ;;  %v803_v13 = vsel %vm324_vm0, %v3369_v58, %v802_v40  ;;  %v3473_v55 = vld [vmem:[%s3375_s20 + $0x10] sm:$0xff] }
 0x10f   : > { %v814_v24 = vrot.slane %v775_v36, 4  ;;  %v533_v28 = vsel %vm324_vm0, %v532_v27, %v491_v50  ;;  %2523 = vmatpush.xpose.msk.msra.mxu1 %vm1100_vm1, %v803_v13  ;;  %2526 = vmatmul.msk.f32.vlgmr.msra.gmra.mxu2 %vm1100_vm1, %v1094_v37  ;;  %v535_v46 = vsel %vm324_vm0, %v515_v53, %v534_v18  ;;  %v1095_v45 = vmul.f32 0.17677669, %v539_v2 }
 0x110   : > { %2533 = vmatpush.xpose.msk.msrb.mxu2 %vm1100_vm1, %v813_v22  ;;  %v809_v54 = vsel %vm324_vm0, %v808_v7, %v771_v38  ;;  %v1092_v41 = vmul.f32 0.17677669, %v533_v28  ;;  %v810_v43 = vrot.slane %v771_v38, 4  ;;  %v1093_v5 = vmul.f32 0.17677669, %v535_v46 }
 0x111   : > { %2529 = vmatpush.xpose.msk.msrb.mxu0 %vm1100_vm1, %v809_v54  ;;  %v815_v58 = vsel %vm324_vm0, %v3386_v33, %v814_v24  ;;  %v540_v49 = vrot.slane %v527_v29, 4  ;;  %2528 = vmatmul.msk.f32.vlgmr.msra.gmra.mxu3 %vm1100_vm1, %v1095_v45  ;;  %v545_v7 = vsel %vm324_vm0, %v544_v4, %v3405_v61  ;;  %v542_v33 = vrot.slane %v3415_v16, 4 }
 0x112   : > { %2535 = vmatpush.xpose.msk.msrb.mxu3 %vm1100_vm1, %v815_v58  ;;  %2522 = vmatmul.msk.f32.vlgmr.msra.gmra.mxu0 %vm1100_vm1, %v1092_v41  ;;  %v811_v47 = vsel %vm324_vm0, %v3396_v31, %v810_v43  ;;  %v3493_v50 = vpack.i.bf16 %v3473_v55, %v3476_v62  ;;  %v1098_v51 = vmul.f32 0.17677669, %v545_v7  ;;  %v547_v52 = vsel %vm324_vm0, %v531_v9, %v546_v39 }
 0x113   : > { %2531 = vmatpush.xpose.msk.msrb.mxu1 %vm1100_vm1, %v811_v47  ;;  %v541_v31 = vsel %vm324_vm0, %v540_v49, %v3415_v16  ;;  %v543_v34 = vsel %vm324_vm0, %v527_v29, %v542_v33  ;;  %v1099_v25 = vmul.f32 0.17677669, %v547_v52  ;;  %v862_v38 = vrot.slane %v3378_v21, 4 }
 0x114   : > { %2524 = vmatmul.msk.f32.vlgmr.msra.gmra.mxu1 %vm1100_vm1, %v1093_v5  ;;  %2648 = vrot.lane.b32.xlu2 %v3493_v50, %s2890_s17  ;;  %v1096_v61 = vmul.f32 0.17677669, %v541_v31  ;;  %v1097_v0 = vmul.f32 0.17677669, %v543_v34  ;;  %v886_v13 = vrot.slane %v3381_v8, 4 }
 0x117   : > { %2534 = vmatmul.msk.f32.vlgmr.msrb.gmra.mxu2 %vm1100_vm1, %v1098_v51 }
 0x119   : > { %2536 = vmatmul.msk.f32.vlgmr.msrb.gmra.mxu3 %vm1100_vm1, %v1099_v25 }
 0x11a   : > { %2530 = vmatmul.msk.f32.vlgmr.msrb.gmra.mxu0 %vm1100_vm1, %v1096_v61 }
 0x11c   : > { %2532 = vmatmul.msk.f32.vlgmr.msrb.gmra.mxu1 %vm1100_vm1, %v1097_v0 }
 0x171   : > { %v3506_v16 = vpop.f32.mrf.mxu1 }
 0x172   : > { %v1521_v1 = vsel %vm1517_vm2, %v3506_v16, -inf  ;;  %v3510_v26 = vpop.f32.mrf.mxu0 }
 0x173   : > { %1522 = vmax.xlane.f32.xlu2 %v1521_v1  ;;  %v1518_v35 = vsel %vm1517_vm2, %v3510_v26, -inf  ;;  %v2639_v56 = vpop.permute.xlu1 %2638  ;;  %v2634_v30 = vpop.permute.xlu0 %2633 }
 0x174   : > { %1519 = vmax.xlane.f32.xlu1 %v1518_v35  ;;  %v3514_v57 = vpop.f32.mrf.mxu2  ;;  %v2641_v27 = vunpack.i.h.bf16 %v2639_v56  ;;  %v2640_v63 = vunpack.i.l.bf16 %v2639_v56  ;;  %v2636_v19 = vunpack.i.h.bf16 %v2634_v30  ;;  %v2635_v20 = vunpack.i.l.bf16 %v2634_v30 }
 0x175   : > { %v1524_v48 = vsel %vm1517_vm2, %v3514_v57, -inf }
 0x176   : > { %v3516_v23 = vpop.f32.mrf.mxu3  ;;  %v872_v40 = vrot.slane %v2641_v27, 4  ;;  %v896_v32 = vrot.slane %v2640_v63, 4  ;;  %v860_v24 = vrot.slane %v2636_v19, 4  ;;  %v884_v28 = vrot.slane %v2635_v20, 4 }
 0x177   : > { %v1527_v14 = vsel %vm1517_vm2, %v3516_v23, -inf  ;;  %v863_v39 = vsel %vm324_vm0, %v2636_v19, %v862_v38  ;;  %v887_v5 = vsel %vm324_vm0, %v2635_v20, %v886_v13 }
 0x178   : > { %1528 = vmax.xlane.f32.xlu0 %v1527_v14  ;;  %v861_v45 = vsel %vm324_vm0, %v860_v24, %v3378_v21  ;;  %v885_v47 = vsel %vm324_vm0, %v884_v28, %v3381_v8  ;;  %v871_v21 = vperm.slane %v863_v39, %v3144_v15  ;;  %v895_v8 = vperm.slane %v887_v5, %v3144_v15 }
 0x179   : > { %v867_v31 = vperm.slane %v861_v45, %v3144_v15  ;;  %v891_v51 = vperm.slane %v885_v47, %v3144_v15 }
 0x17a   : > { %v3520_v60 = vpop.f32.mrf.mxu1  ;;  %v922_v35 = vrot.slane %v871_v21, 4 }
 0x17b   : > { %1525 = vmax.xlane.f32.xlu2 %v1524_v48  ;;  %v1533_v3 = vsel %vm1517_vm2, %v3520_v60, -inf  ;;  %v2644_v9 = vpop.permute.xlu1 %2643  ;;  %v910_v1 = vrot.slane %v867_v31, 4  ;;  %v934_v14 = vrot.slane %v891_v51, 4  ;;  %v946_v48 = vrot.slane %v895_v8, 4 }
 0x17c   : > { %v3526_v18 = vpop.f32.mrf.mxu0  ;;  %1534 = vmax.xlane.f32.xlu1 %v1533_v3  ;;  %v3528_v53 = vpop.f32.mrf.mxu2  ;;  %v2646_v59 = vunpack.i.h.bf16 %v2644_v9  ;;  %v2645_v36 = vunpack.i.l.bf16 %v2644_v9 }
 0x17d   : > { %v1530_v10 = vsel %vm1517_vm2, %v3526_v18, -inf  ;;  %v1536_v44 = vsel %vm1517_vm2, %v3528_v53, -inf }
 0x17e   : > { %v3534_v17 = vpop.f32.mrf.mxu3  ;;  %v874_v22 = vrot.slane %v2646_v59, 4  ;;  %v898_v37 = vrot.slane %v2645_v36, 4  ;;  %v873_v4 = vsel %vm324_vm0, %v872_v40, %v2646_v59  ;;  %v897_v43 = vsel %vm324_vm0, %v896_v32, %v2645_v36 }
 0x17f   : > { %v1539_v11 = vsel %vm1517_vm2, %v3534_v17, -inf  ;;  %v879_v58 = vperm.slane %v873_v4, %v3144_v15  ;;  %v903_v33 = vperm.slane %v897_v43, %v3144_v15 }
 0x180   : > { %1531 = vmax.xlane.f32.xlu0 %v1530_v10  ;;  %v875_v41 = vsel %vm324_vm0, %v2641_v27, %v874_v22  ;;  %v899_v46 = vsel %vm324_vm0, %v2640_v63, %v898_v37 }
 0x181   : > { %v883_v7 = vperm.slane %v875_v41, %v3144_v15  ;;  %v908_v34 = vrot.slane %v879_v58, 4  ;;  %v932_v25 = vrot.slane %v903_v33, 4  ;;  %v911_v63 = vsel %vm324_vm0, %v879_v58, %v910_v1 }
 0x182   : > { %v935_v59 = vsel %vm324_vm0, %v903_v33, %v934_v14  ;;  %v919_v38 = vperm.slane %v911_v63, %v3161_v42 }
 0x183   : > { %1537 = vmax.xlane.f32.xlu2 %v1536_v44  ;;  %v920_v61 = vrot.slane %v883_v7, 4  ;;  %v909_v10 = vsel %vm324_vm0, %v908_v34, %v867_v31  ;;  %v933_v44 = vsel %vm324_vm0, %v932_v25, %v891_v51  ;;  %v923_v36 = vsel %vm324_vm0, %v883_v7, %v922_v35 }
 0x184   : > { %v939_v9 = vperm.slane %v933_v44, %v3161_v42  ;;  %v943_v4 = vperm.slane %v935_v59, %v3161_v42  ;;  %v931_v13 = vperm.slane %v923_v36, %v3161_v42  ;;  %v962_v45 = vrot.slane %v919_v38, 4 }
 0x186   : > { %v956_v20 = vrot.slane %v939_v9, 4  ;;  %v960_v58 = vrot.slane %v943_v4, 4  ;;  %v970_v47 = vrot.slane %v931_v13, 4  ;;  %v963_v7 = vsel %vm324_vm0, %v943_v4, %v962_v45 }
 0x187   : > { %1749 = vmatpush.msra.mxu3 %v963_v7 }
 0x188   : > { %1540 = vmax.xlane.f32.xlu0 %v1539_v11  ;;  %v921_v11 = vsel %vm324_vm0, %v920_v61, %v871_v21  ;;  %v3618_v61 = vpop.permute.xlu2 %2648 }
 0x189   : > { %v927_v27 = vperm.slane %v921_v11, %v3161_v42  ;;  %v2650_v45 = vunpack.i.l.bf16 %v3618_v61 }
 0x18b   : > { %v966_v22 = vrot.slane %v927_v27, 4 }
 0x18f   : > { %v3538_v12 = vpop.f32.mrf.mxu0 }
 0x190   : > { %v1542_v29 = vsel %vm1517_vm2, %v3538_v12, -inf }
 0x191   : > { %1543 = vmax.xlane.f32.xlu1 %v1542_v29  ;;  %v915_v29 = vperm.slane %v909_v10, %v3161_v42  ;;  %v3590_v19 = vpop.f32.mrf.mxu1 }
 0x192   : > { %v3542_v6 = vpop.f32.mrf.mxu2  ;;  %v1545_v34 = vsel %vm1517_vm2, %v3590_v19, -inf }
 0x193   : > { %v1548_v2 = vsel %vm1517_vm2, %v3542_v6, -inf  ;;  %v957_v28 = vsel %vm324_vm0, %v956_v20, %v915_v29 }
 0x194   : > { %v3551_v54 = vpop.f32.mrf.mxu3  ;;  %1680 = vmatpush.msra.mxu0 %v957_v28 }
 0x195   : > { %v1551_v49 = vsel %vm1517_vm2, %v3551_v54, -inf }
 0x197   : > { %v3574_v52 = vpop.f32.mrf.mxu0 }
 0x198   : > { %v1554_v3 = vsel %vm1517_vm2, %v3574_v52, -inf }
 0x199   : > { %1549 = vmax.xlane.f32.xlu1 %v1548_v2  ;;  %v958_v2 = vrot.slane %v915_v29, 4  ;;  %v3608_v31 = vpop.f32.mrf.mxu1 }
 0x19a   : > { %v1557_v21 = vsel %vm1517_vm2, %v3608_v31, -inf  ;;  %v3612_v51 = vpop.f32.mrf.mxu2 }
 0x19b   : > { %2658 = vrot.lane.b32.xlu2 %v3493_v50, %s2892_s22  ;;  %v959_v41 = vsel %vm324_vm0, %v939_v9, %v958_v2 }
 0x19c   : > { %2653 = vrot.lane.b32.xlu0 %v3493_v50, %s2891_s25  ;;  %v907_v50 = vperm.slane %v899_v46, %v3144_v15  ;;  %v3592_v37 = vpop.f32.mrf.mxu3  ;;  %1703 = vmatpush.msra.mxu1 %v959_v41 }
 0x19d   : > { %v1563_v5 = vsel %vm1517_vm2, %v3592_v37, -inf }
 0x19e   : > { %v944_v0 = vrot.slane %v907_v50, 4  ;;  %v947_v40 = vsel %vm324_vm0, %v907_v50, %v946_v48 }
 0x19f   : > { %v955_v24 = vperm.slane %v947_v40, %v3161_v42 }
 0x1a0   : > { %v945_v56 = vsel %vm324_vm0, %v944_v0, %v895_v8  ;;  %v1560_v8 = vsel %vm1517_vm2, %v3612_v51, -inf }
 0x1a1   : > { %1552 = vmax.xlane.f32.xlu1 %v1551_v49  ;;  %v951_v30 = vperm.slane %v945_v56, %v3161_v42  ;;  %v968_v39 = vrot.slane %v955_v24, 4  ;;  %v961_v49 = vsel %vm324_vm0, %v960_v58, %v919_v38  ;;  %v971_v50 = vsel %vm324_vm0, %v955_v24, %v970_v47 }
 0x1a2   : > { %1726 = vmatpush.msra.mxu2 %v961_v49  ;;  %1841 = vmatpush.msrb.mxu3 %v971_v50  ;;  %v998_v49 = vrot.slane %v3476_v62, 4 }
 0x1a3   : > { %v964_v32 = vrot.slane %v951_v30, 4  ;;  %v967_v46 = vsel %vm324_vm0, %v951_v30, %v966_v22  ;;  %v969_v33 = vsel %vm324_vm0, %v968_v39, %v931_v13 }
 0x1a4   : > { %1795 = vmatpush.msrb.mxu1 %v967_v46  ;;  %1818 = vmatpush.msrb.mxu2 %v969_v33 }
 0x1a5   : > { %v965_v43 = vsel %vm324_vm0, %v964_v32, %v927_v27 }
 0x1a6   : > { %1772 = vmatpush.msrb.mxu0 %v965_v43 }
 0x1a9   : > { %1555 = vmax.xlane.f32.xlu1 %v1554_v3 }
 0x1b1   : > { %1564 = vmax.xlane.f32.xlu1 %v1563_v5  ;;  %v974_v5 = vrot.slane %v3473_v55, 4 }
 0x1b9   : > { %1558 = vmax.xlane.f32.xlu1 %v1557_v21  ;;  %v996_v21 = vrot.slane %v2650_v45, 4 }
 0x1c4   : > { %1561 = vmax.xlane.f32.xlu2 %v1560_v8 }
 0x1c6   : > { %1546 = vmax.xlane.f32.xlu0 %v1545_v34 }
 0x1e6   : > { %v1523_v25 = vpop.xlane.xlu2 %1522 }
 0x1e7   : > { %v1567_v0 = vsub.f32 %v3506_v16, %v1523_v25  ;;  %v1520_v1 = vpop.xlane.xlu1 %1519 }
 0x1e8   : > { %v1566_v35 = vsub.f32 %v3510_v26, %v1520_v1 }
 0x1e9   : > { %v1584_v14 = vmul.f32 1.442695, %v1567_v0  ;;  %v999_v0 = vsel %vm324_vm0, %v2650_v45, %v998_v49 }
 0x1ea   : > { %v1582_v48 = vmul.f32 1.442695, %v1566_v35 }
 0x1eb   : > { %2662 = vpow2.f32 %v1584_v14  ;;  %v1529_v3 = vpop.xlane.xlu0 %1528 }
 0x1ec   : > { %2664 = vpow2.f32 %v1582_v48  ;;  %v1569_v10 = vsub.f32 %v3516_v23, %v1529_v3  ;;  %v997_v3 = vsel %vm324_vm0, %v996_v21, %v3476_v62 }
 0x1ee   : > { %v1526_v44 = vpop.xlane.xlu2 %1525  ;;  %v1588_v11 = vmul.f32 1.442695, %v1569_v10 }
 0x1ef   : > { %v1568_v56 = vsub.f32 %v3514_v57, %v1526_v44  ;;  %v1535_v29 = vpop.xlane.xlu1 %1534 }
 0x1f0   : > { %2666 = vpow2.f32 %v1588_v11  ;;  %v1571_v16 = vsub.f32 %v3520_v60, %v1535_v29  ;;  %v1007_v11 = vperm.slane %v999_v0, %v3144_v15 }
 0x1f1   : > { %v2663_v9 = vpop.eup %2662  ;;  %v1586_v27 = vmul.f32 1.442695, %v1568_v56 }
 0x1f2   : > { %2538 = vmatmul.msk.f32.vlgmr.msra.gmra.mxu1 %vm1517_vm2, %v2663_v9  ;;  %v1617_v26 = vsel %vm1517_vm2, %v2663_v9, 0.0  ;;  %v2665_v30 = vpop.eup %2664  ;;  %v1592_v63 = vmul.f32 1.442695, %v1571_v16  ;;  %v1003_v16 = vperm.slane %v997_v3, %v3144_v15 }
 0x1f3   : > { %2668 = vpow2.f32 %v1586_v27  ;;  %1618 = vadd.xlane.f32.xlu1 %v1617_v26  ;;  %2537 = vmatmul.msk.f32.vlgmr.msra.gmra.mxu0 %vm1517_vm2, %v2665_v30  ;;  %v1614_v23 = vsel %vm1517_vm2, %v2665_v30, 0.0  ;;  %v1532_v59 = vpop.xlane.xlu0 %1531 }
 0x1f4   : > { %2670 = vpow2.f32 %v1592_v63  ;;  %1615 = vadd.xlane.f32.xlu0 %v1614_v23  ;;  %v1570_v57 = vsub.f32 %v3526_v18, %v1532_v59  ;;  %v1058_v59 = vrot.slane %v1007_v11, 4 }
 0x1f6   : > { %v1538_v36 = vpop.xlane.xlu2 %1537  ;;  %v2667_v40 = vpop.eup %2666  ;;  %v1590_v60 = vmul.f32 1.442695, %v1570_v57 }
 0x1f7   : > { %v1572_v20 = vsub.f32 %v3528_v53, %v1538_v36  ;;  %2540 = vmatmul.msk.f32.vlgmr.msra.gmra.mxu3 %vm1517_vm2, %v2667_v40  ;;  %v1623_v22 = vsel %vm1517_vm2, %v2667_v40, 0.0 }
 0x1f8   : > { %2672 = vpow2.f32 %v1590_v60 }
 0x1f9   : > { %v2669_v2 = vpop.eup %2668  ;;  %v1594_v32 = vmul.f32 1.442695, %v1572_v20 }
 0x1fa   : > { %2539 = vmatmul.msk.f32.vlgmr.msra.gmra.mxu2 %vm1517_vm2, %v2669_v2  ;;  %v2671_v38 = vpop.eup %2670  ;;  %v1620_v43 = vsel %vm1517_vm2, %v2669_v2, 0.0 }
 0x1fb   : > { %2674 = vpow2.f32 %v1594_v32  ;;  %1624 = vadd.xlane.f32.xlu1 %v1623_v22  ;;  %2542 = vmatmul.msk.f32.vlgmr.msrb.gmra.mxu1 %vm1517_vm2, %v2671_v38  ;;  %v1541_v18 = vpop.xlane.xlu0 %1540  ;;  %v1629_v50 = vsel %vm1517_vm2, %v2671_v38, 0.0  ;;  %v1046_v22 = vrot.slane %v1003_v16, 4 }
 0x1fc   : > { %v1573_v4 = vsub.f32 %v3534_v17, %v1541_v18  ;;  %v2651_v17 = vunpack.i.h.bf16 %v3618_v61 }
 0x1fe   : > { %v2673_v13 = vpop.eup %2672  ;;  %v1596_v24 = vmul.f32 1.442695, %v1573_v4  ;;  %v972_v7 = vrot.slane %v2651_v17, 4  ;;  %v2659_v33 = vpop.permute.xlu2 %2658 }
 0x1ff   : > { %2541 = vmatmul.msk.f32.vlgmr.msrb.gmra.mxu0 %vm1517_vm2, %v2673_v13  ;;  %v1626_v53 = vsel %vm1517_vm2, %v2673_v13, 0.0  ;;  %v2661_v34 = vunpack.i.h.bf16 %v2659_v33  ;;  %v2660_v1 = vunpack.i.l.bf16 %v2659_v33 }
 0x200   : > { %2676 = vpow2.f32 %v1596_v24  ;;  %1627 = vadd.xlane.f32.xlu2 %v1626_v53  ;;  %v973_v25 = vsel %vm324_vm0, %v972_v7, %v3473_v55 }
 0x201   : > { %v2675_v28 = vpop.eup %2674  ;;  %v979_v44 = vperm.slane %v973_v25, %v3144_v15  ;;  %v986_v56 = vrot.slane %v2661_v34, 4  ;;  %v1010_v9 = vrot.slane %v2660_v1, 4 }
 0x202   : > { %2543 = vmatmul.msk.f32.vlgmr.msrb.gmra.mxu2 %vm1517_vm2, %v2675_v28  ;;  %v1632_v41 = vsel %vm1517_vm2, %v2675_v28, 0.0 }
 0x203   : > { %1633 = vadd.xlane.f32.xlu0 %v1632_v41  ;;  %1621 = vadd.xlane.f32.xlu1 %v1620_v43  ;;  %v1022_v60 = vrot.slane %v979_v44, 4 }
 0x204   : > { %v1544_v46 = vpop.xlane.xlu1 %1543 }
 0x205   : > { %v1574_v58 = vsub.f32 %v3538_v12, %v1544_v46  ;;  %v975_v12 = vsel %vm324_vm0, %v2651_v17, %v974_v5 }
 0x206   : > { %v2677_v47 = vpop.eup %2676  ;;  %v983_v48 = vperm.slane %v975_v12, %v3144_v15 }
 0x207   : > { %v1598_v39 = vmul.f32 1.442695, %v1574_v58  ;;  %2544 = vmatmul.msk.f32.vlgmr.msrb.gmra.mxu3 %vm1517_vm2, %v2677_v47  ;;  %v1635_v8 = vsel %vm1517_vm2, %v2677_v47, 0.0 }
 0x208   : > { %1630 = vadd.xlane.f32.xlu2 %v1629_v50  ;;  %v1034_v23 = vrot.slane %v983_v48, 4 }
 0x209   : > { %2678 = vpow2.f32 %v1598_v39 }
 0x20b   : > { %1636 = vadd.xlane.f32.xlu0 %v1635_v8 }
 0x20c   : > { %v1550_v61 = vpop.xlane.xlu1 %1549 }
 0x20d   : > { %v1576_v35 = vsub.f32 %v3542_v6, %v1550_v61 }
 0x20e   : > { %v2654_v29 = vpop.permute.xlu0 %2653 }
 0x20f   : > { %v3654_v14 = vpop.eup %2678  ;;  %v1602_v10 = vmul.f32 1.442695, %v1576_v35  ;;  %v2656_v27 = vunpack.i.h.bf16 %v2654_v29  ;;  %v2655_v6 = vunpack.i.l.bf16 %v2654_v29 }
 0x210   : > { %v1638_v55 = vsel %vm1517_vm2, %v3654_v14, 0.0 }
 0x211   : > { %2680 = vpow2.f32 %v1602_v10  ;;  %1639 = vadd.xlane.f32.xlu1 %v1638_v55  ;;  %v984_v26 = vrot.slane %v2656_v27, 4  ;;  %v987_v62 = vsel %vm324_vm0, %v2656_v27, %v986_v56  ;;  %v1008_v30 = vrot.slane %v2655_v6, 4 }
 0x212   : > { %v1011_v63 = vsel %vm324_vm0, %v2655_v6, %v1010_v9  ;;  %v995_v57 = vperm.slane %v987_v62, %v3144_v15 }
 0x213   : > { %v1019_v36 = vperm.slane %v1011_v63, %v3144_v15  ;;  %v985_v20 = vsel %vm324_vm0, %v984_v26, %v2661_v34  ;;  %v1009_v2 = vsel %vm324_vm0, %v1008_v30, %v2660_v1 }
 0x214   : > { %v1553_v40 = vpop.xlane.xlu1 %1552  ;;  %v991_v38 = vperm.slane %v985_v20, %v3144_v15  ;;  %v1032_v18 = vrot.slane %v995_v57, 4  ;;  %v1015_v4 = vperm.slane %v1009_v2, %v3144_v15  ;;  %v1035_v28 = vsel %vm324_vm0, %v995_v57, %v1034_v23 }
 0x215   : > { %v1577_v32 = vsub.f32 %v3551_v54, %v1553_v40  ;;  %v1056_v24 = vrot.slane %v1019_v36, 4  ;;  %v1059_v41 = vsel %vm324_vm0, %v1019_v36, %v1058_v59  ;;  %v1043_v39 = vperm.slane %v1035_v28, %v3161_v42 }
 0x216   : > { %v1020_v43 = vrot.slane %v991_v38, 4  ;;  %v1044_v46 = vrot.slane %v1015_v4, 4  ;;  %v1023_v58 = vsel %vm324_vm0, %v991_v38, %v1022_v60  ;;  %v1047_v45 = vsel %vm324_vm0, %v1015_v4, %v1046_v22 }
 0x217   : > { %v2681_v13 = vpop.eup %2680  ;;  %v1604_v53 = vmul.f32 1.442695, %v1577_v32  ;;  %v1031_v54 = vperm.slane %v1023_v58, %v3161_v42  ;;  %v1055_v47 = vperm.slane %v1047_v45, %v3161_v42  ;;  %v1067_v5 = vperm.slane %v1059_v41, %v3161_v42 }
 0x218   : > { %v1644_v17 = vsel %vm1517_vm2, %v2681_v13, 0.0  ;;  %v1021_v49 = vsel %vm324_vm0, %v1020_v43, %v979_v44  ;;  %v1045_v7 = vsel %vm324_vm0, %v1044_v46, %v1003_v16  ;;  %v1082_v50 = vrot.slane %v1043_v39, 4 }
 0x219   : > { %2682 = vpow2.f32 %v1604_v53  ;;  %1645 = vadd.xlane.f32.xlu2 %v1644_v17  ;;  %v1074_v33 = vrot.slane %v1031_v54, 4  ;;  %v1027_v21 = vperm.slane %v1021_v49, %v3161_v42  ;;  %v1051_v8 = vperm.slane %v1045_v7, %v3161_v42 }
 0x21a   : > { %v1072_v12 = vrot.slane %v1055_v47, 4  ;;  %v1080_v34 = vrot.slane %v1067_v5, 4  ;;  %v1033_v25 = vsel %vm324_vm0, %v1032_v18, %v983_v48  ;;  %v1057_v0 = vsel %vm324_vm0, %v1056_v24, %v1007_v11 }
 0x21b   : > { %v1075_v1 = vsel %vm324_vm0, %v1055_v47, %v1074_v33  ;;  %v1068_v35 = vrot.slane %v1051_v8, 4  ;;  %v1070_v3 = vrot.slane %v1027_v21, 4  ;;  %v1083_v44 = vsel %vm324_vm0, %v1067_v5, %v1082_v50 }
 0x21c   : > { %v1556_v61 = vpop.xlane.xlu1 %1555  ;;  %v1073_v10 = vsel %vm324_vm0, %v1072_v12, %v1031_v54  ;;  %1933 = vmatpush.msra.mxu3 %v1075_v1  ;;  %v1039_v29 = vperm.slane %v1033_v25, %v3161_v42  ;;  %v1063_v9 = vperm.slane %v1057_v0, %v3161_v42  ;;  %v1081_v27 = vsel %vm324_vm0, %v1080_v34, %v1043_v39 }
 0x21d   : > { %v1578_v56 = vsub.f32 %v3574_v52, %v1556_v61  ;;  %1910 = vmatpush.msra.mxu2 %v1073_v10  ;;  %v1069_v48 = vsel %vm324_vm0, %v1068_v35, %v1027_v21  ;;  %v1071_v11 = vsel %vm324_vm0, %v1051_v8, %v1070_v3 }
 0x21e   : > { %2025 = vmatpush.msrb.mxu3 %v1083_v44  ;;  %2547 = vmatmul.msk.f32.vlgmr.msra.gmra.mxu2 %vm1517_vm2, %v2681_v13  ;;  %v1078_v16 = vrot.slane %v1039_v29, 4  ;;  %v1076_v26 = vrot.slane %v1063_v9, 4 }
 0x21f   : > { %v2683_v55 = vpop.eup %2682  ;;  %1864 = vmatpush.msra.mxu0 %v1069_v48  ;;  %v1606_v6 = vmul.f32 1.442695, %v1578_v56  ;;  %2002 = vmatpush.msrb.mxu2 %v1081_v27 }
 0x220   : > { %v1647_v52 = vsel %vm1517_vm2, %v2683_v55, 0.0  ;;  %1887 = vmatpush.msra.mxu1 %v1071_v11  ;;  %2545 = vmatmul.msk.f32.vlgmr.msra.gmra.mxu0 %vm1517_vm2, %v3654_v14  ;;  %v1079_v62 = vsel %vm324_vm0, %v1063_v9, %v1078_v16  ;;  %v1077_v30 = vsel %vm324_vm0, %v1076_v26, %v1039_v29 }
 0x221   : > { %2684 = vpow2.f32 %v1606_v6  ;;  %2548 = vmatmul.msk.f32.vlgmr.msra.gmra.mxu3 %vm1517_vm2, %v2683_v55  ;;  %1648 = vadd.xlane.f32.xlu1 %v1647_v52 }
 0x222   : > { %1979 = vmatpush.msrb.mxu1 %v1079_v62  ;;  %1956 = vmatpush.msrb.mxu0 %v1077_v30 }
 0x224   : > { %v1565_v63 = vpop.xlane.xlu1 %1564 }
 0x225   : > { %v1581_v23 = vsub.f32 %v3592_v37, %v1565_v63 }
 0x227   : > { %v1612_v59 = vmul.f32 1.442695, %v1581_v23  ;;  %v2685_v57 = vpop.eup %2684 }
 0x228   : > { %v1650_v36 = vsel %vm1517_vm2, %v2685_v57, 0.0  ;;  %2549 = vmatmul.msk.f32.vlgmr.msrb.gmra.mxu0 %vm1517_vm2, %v2685_v57 }
 0x229   : > { %2686 = vpow2.f32 %v1612_v59  ;;  %1651 = vadd.xlane.f32.xlu1 %v1650_v36 }
 0x22c   : > { %v1559_v2 = vpop.xlane.xlu1 %1558 }
 0x22d   : > { %v1579_v38 = vsub.f32 %v3608_v31, %v1559_v2 }
 0x22f   : > { %v2687_v14 = vpop.eup %2686  ;;  %v1608_v4 = vmul.f32 1.442695, %v1579_v38 }
 0x230   : > { %2552 = vmatmul.msk.f32.vlgmr.msrb.gmra.mxu3 %vm1517_vm2, %v2687_v14  ;;  %v1659_v40 = vsel %vm1517_vm2, %v2687_v14, 0.0 }
 0x231   : > { %1660 = vadd.xlane.f32.xlu1 %v1659_v40 }
 0x237   : > { %v1562_v60 = vpop.xlane.xlu2 %1561 }
 0x238   : > { %v1580_v20 = vsub.f32 %v3612_v51, %v1562_v60 }
 0x239   : > { %v1547_v37 = vpop.xlane.xlu0 %1546 }
 0x23a   : > { %v1610_v32 = vmul.f32 1.442695, %v1580_v20  ;;  %v1575_v22 = vsub.f32 %v3590_v19, %v1547_v37 }
 0x23c   : > { %2688 = vpow2.f32 %v1610_v32  ;;  %v1600_v18 = vmul.f32 1.442695, %v1575_v22 }
 0x23e   : > { %2690 = vpow2.f32 %v1600_v18 }
 0x23f   : > { %2692 = vpow2.f32 %v1608_v4 }
 0x242   : > { %v2689_v13 = vpop.eup %2688 }
 0x243   : > { %2551 = vmatmul.msk.f32.vlgmr.msrb.gmra.mxu2 %vm1517_vm2, %v2689_v13  ;;  %v1656_v24 = vsel %vm1517_vm2, %v2689_v13, 0.0 }
 0x244   : > { %1657 = vadd.xlane.f32.xlu2 %v1656_v24  ;;  %v2691_v53 = vpop.eup %2690 }
 0x245   : > { %2546 = vmatmul.msk.f32.vlgmr.msra.gmra.mxu1 %vm1517_vm2, %v2691_v53  ;;  %v1641_v51 = vsel %vm1517_vm2, %v2691_v53, 0.0  ;;  %v2693_v19 = vpop.eup %2692 }
 0x246   : > { %1642 = vadd.xlane.f32.xlu0 %v1641_v51  ;;  %v1653_v31 = vsel %vm1517_vm2, %v2693_v19, 0.0 }
 0x24d   : > { %2550 = vmatmul.msk.f32.vlgmr.msrb.gmra.mxu1 %vm1517_vm2, %v2693_v19 }
 0x24e   : > { %1654 = vadd.xlane.f32.xlu0 %v1653_v31 }
 0x266   : > { %v1619_v28 = vpop.xlane.xlu1 %1618 }
 0x267   : > { %v1616_v43 = vpop.xlane.xlu0 %1615 }
 0x268   : > { %2694 = vrcp.f32 %v1616_v43 }
 0x269   : > { %2696 = vrcp.f32 %v1619_v28 }
 0x26e   : > { %v1625_v41 = vpop.xlane.xlu1 %1624  ;;  %v2695_v45 = vpop.eup %2694 }
 0x26f   : > { %2698 = vrcp.f32 %v1625_v41  ;;  %v1705_v47 = vpop.f32.mrf.mxu1  ;;  %v2697_v49 = vpop.eup %2696 }
 0x270   : > { %v1682_v58 = vpop.f32.mrf.mxu0  ;;  %v2047_v8 = vmul.f32 %v2697_v49, %v1705_v47 }
 0x271   : > { %v2046_v39 = vmul.f32 %v2695_v45, %v1682_v58 }
 0x272   : > { %v2076_v35 = vrot.slane %v2047_v8, 4 }
 0x273   : > { %v1628_v46 = vpop.xlane.xlu2 %1627  ;;  %v2064_v34 = vrot.slane %v2046_v39, 4 }
 0x275   : > { %v2699_v33 = vpop.eup %2698 }
 0x276   : > { %v1622_v17 = vpop.xlane.xlu1 %1621  ;;  %v1634_v54 = vpop.xlane.xlu0 %1633 }
 0x277   : > { %2700 = vrcp.f32 %v1622_v17 }
 0x278   : > { %2702 = vrcp.f32 %v1628_v46  ;;  %v1797_v52 = vpop.f32.mrf.mxu1 }
 0x279   : > { %2704 = vrcp.f32 %v1634_v54 }
 0x27a   : > { %v1751_v5 = vpop.f32.mrf.mxu3 }
 0x27b   : > { %v1631_v7 = vpop.xlane.xlu2 %1630  ;;  %v2049_v12 = vmul.f32 %v2699_v33, %v1751_v5 }
 0x27c   : > { %2706 = vrcp.f32 %v1631_v7  ;;  %v1774_v61 = vpop.f32.mrf.mxu0 }
 0x27d   : > { %v1728_v50 = vpop.f32.mrf.mxu2  ;;  %v2701_v21 = vpop.eup %2700  ;;  %v2074_v3 = vrot.slane %v2049_v12, 4  ;;  %v2077_v48 = vsel %vm324_vm0, %v2049_v12, %v2076_v35 }
 0x27e   : > { %v2048_v25 = vmul.f32 %v2701_v21, %v1728_v50  ;;  %v2703_v0 = vpop.eup %2702  ;;  %v1637_v44 = vpop.xlane.xlu0 %1636  ;;  %v2085_v26 = vperm.slane %v2077_v48, %v3144_v15 }
 0x27f   : > { %v2050_v10 = vmul.f32 %v2703_v0, %v1774_v61  ;;  %v2705_v55 = vpop.eup %2704  ;;  %2708 = vrcp.f32 %v1637_v44  ;;  %v2075_v27 = vsel %vm324_vm0, %v2074_v3, %v2047_v8 }
 0x280   : > { %v2065_v1 = vsel %vm324_vm0, %v2048_v25, %v2064_v34  ;;  %v2062_v56 = vrot.slane %v2048_v25, 4  ;;  %v2081_v57 = vperm.slane %v2075_v27, %v3144_v15  ;;  %v2122_v60 = vrot.slane %v2085_v26, 4 }
 0x281   : > { %v2073_v29 = vperm.slane %v2065_v1, %v3144_v15  ;;  %v2088_v6 = vrot.slane %v2050_v10, 4 }
 0x282   : > { %v2707_v11 = vpop.eup %2706  ;;  %v2063_v62 = vsel %vm324_vm0, %v2062_v56, %v2046_v39  ;;  %v2110_v38 = vrot.slane %v2081_v57, 4 }
 0x283   : > { %v2124_v30 = vrot.slane %v2073_v29, 4  ;;  %v2051_v63 = vmul.f32 %v2707_v11, %v1797_v52  ;;  %v2069_v36 = vperm.slane %v2063_v62, %v3144_v15  ;;  %v2123_v4 = vsel %vm324_vm0, %v2122_v60, %v2073_v29 }
 0x284   : > { %v2129_v41 = vperm.slane %v2123_v4, %v3161_v42 }
 0x285   : > { %v1820_v9 = vpop.f32.mrf.mxu2  ;;  %v2709_v40 = vpop.eup %2708  ;;  %v2125_v32 = vsel %vm324_vm0, %v2085_v26, %v2124_v30  ;;  %v2100_v22 = vrot.slane %v2051_v63, 4  ;;  %v2112_v13 = vrot.slane %v2069_v36, 4  ;;  %v2111_v43 = vsel %vm324_vm0, %v2110_v38, %v2069_v36 }
 0x286   : > { %v2052_v16 = vmul.f32 %v2705_v55, %v1820_v9  ;;  %v2133_v51 = vperm.slane %v2125_v32, %v3161_v42  ;;  %v2117_v33 = vperm.slane %v2111_v43, %v3161_v42  ;;  %v2168_v21 = vrot.slane %v2129_v41, 4 }
 0x287   : > { %v2113_v45 = vsel %vm324_vm0, %v2081_v57, %v2112_v13 }
 0x288   : > { %v2086_v23 = vrot.slane %v2052_v16, 4  ;;  %v2089_v59 = vsel %vm324_vm0, %v2052_v16, %v2088_v6  ;;  %v2172_v47 = vrot.slane %v2133_v51, 4  ;;  %v2121_v0 = vperm.slane %v2113_v45, %v3161_v42  ;;  %v1640_v6 = vpop.xlane.xlu1 %1639 }
 0x289   : > { %v2097_v20 = vperm.slane %v2089_v59, %v3144_v15  ;;  %v2160_v3 = vrot.slane %v2117_v33, 4 }
 0x28a   : > { %v2087_v14 = vsel %vm324_vm0, %v2086_v23, %v2050_v10  ;;  %v1843_v2 = vpop.f32.mrf.mxu3  ;;  %v2164_v9 = vrot.slane %v2121_v0, 4 }
 0x28b   : > { %v2053_v37 = vmul.f32 %v2709_v40, %v1843_v2  ;;  %v2093_v18 = vperm.slane %v2087_v14, %v3144_v15  ;;  %v2148_v19 = vrot.slane %v2097_v20, 4 }
 0x28c   : > { %v1646_v52 = vpop.xlane.xlu2 %1645 }
 0x28d   : > { %v2098_v24 = vrot.slane %v2053_v37, 4  ;;  %v2101_v53 = vsel %vm324_vm0, %v2053_v37, %v2100_v22  ;;  %v2136_v46 = vrot.slane %v2093_v18, 4  ;;  %2710 = vrcp.f32 %v1646_v52 }
 0x28e   : > { %v2109_v31 = vperm.slane %v2101_v53, %v3144_v15  ;;  %2712 = vrcp.f32 %v1640_v6 }
 0x28f   : > { %v2099_v28 = vsel %vm324_vm0, %v2098_v24, %v2051_v63 }
 0x290   : > { %v2105_v17 = vperm.slane %v2099_v28, %v3144_v15  ;;  %v2146_v58 = vrot.slane %v2109_v31, 4  ;;  %v2149_v54 = vsel %vm324_vm0, %v2109_v31, %v2148_v19 }
 0x291   : > { %v2157_v39 = vperm.slane %v2149_v54, %v3161_v42 }
 0x292   : > { %v2134_v5 = vrot.slane %v2105_v17, 4  ;;  %v2147_v49 = vsel %vm324_vm0, %v2146_v58, %v2097_v20  ;;  %v2137_v7 = vsel %vm324_vm0, %v2105_v17, %v2136_v46 }
 0x293   : > { %v2153_v50 = vperm.slane %v2147_v49, %v3161_v42  ;;  %v2145_v8 = vperm.slane %v2137_v7, %v3161_v42  ;;  %v3748_v12 = vsel %vm324_vm0, %v2157_v39, %v2172_v47  ;;  %v2170_v55 = vrot.slane %v2157_v39, 4  ;;  %v2711_v30 = vpop.eup %2710 }
 0x294   : > { %v2135_v34 = vsel %vm324_vm0, %v2134_v5, %v2093_v18  ;;  %v1649_v16 = vpop.xlane.xlu1 %1648  ;;  %v2713_v40 = vpop.eup %2712 }
 0x295   : > { %v2166_v61 = vrot.slane %v2153_v50, 4  ;;  %v2169_v25 = vsel %vm324_vm0, %v2153_v50, %v2168_v21  ;;  %v2162_v1 = vrot.slane %v2145_v8, 4  ;;  %v2141_v35 = vperm.slane %v2135_v34, %v3161_v42 }
 0x296   : > { %2312 = vrot.lane.b32.xlu1 %v2169_v25, %s2891_s25  ;;  %v2171_v11 = vsel %vm324_vm0, %v2170_v55, %v2133_v51  ;;  %v2165_v27 = vsel %vm324_vm0, %v2145_v8, %v2164_v9  ;;  %2714 = vrcp.f32 %v1649_v16 }
 0x297   : > { %v2163_v10 = vsel %vm324_vm0, %v2162_v1, %v2121_v0  ;;  %v3757_v44 = vsel %vm324_vm0, %v2166_v61, %v2129_v41  ;;  %v2158_v56 = vrot.slane %v2141_v35, 4  ;;  %v2161_v29 = vsel %vm324_vm0, %v2141_v35, %v2160_v3 }
 0x298   : > { %2296 = vrot.lane.b32.xlu0 %v2163_v10, %s2890_s17  ;;  %2288 = vrot.lane.b32.xlu2 %v2161_v29, %s2891_s25 }
 0x299   : > { %v3763_v48 = vsel %vm324_vm0, %v2158_v56, %v2117_v33 }
 0x29c   : > { %v1652_v26 = vpop.xlane.xlu1 %1651  ;;  %v2715_v20 = vpop.eup %2714 }
 0x29d   : > { %v1866_v63 = vpop.f32.mrf.mxu0  ;;  %2716 = vrcp.f32 %v1652_v26 }
 0x29e   : > { %2320 = vrot.lane.b32.xlu1 %v2171_v11, %s2890_s17  ;;  %v2054_v2 = vmul.f32 %v2713_v40, %v1866_v63 }
 0x2a0   : > { %2304 = vrot.lane.b32.xlu2 %v2165_v27, %s2892_s22  ;;  %v2176_v41 = vrot.slane %v2054_v2, 4 }
 0x2a1   : > { %v1912_v62 = vpop.f32.mrf.mxu2 }
 0x2a2   : > { %v2056_v23 = vmul.f32 %v2711_v30, %v1912_v62 }
 0x2a3   : > { %v2717_v38 = vpop.eup %2716 }
 0x2a4   : > { %v2174_v57 = vrot.slane %v2056_v23, 4  ;;  %v1935_v36 = vpop.f32.mrf.mxu3  ;;  %v1661_v60 = vpop.xlane.xlu1 %1660  ;;  %v2177_v47 = vsel %vm324_vm0, %v2056_v23, %v2176_v41 }
 0x2a5   : > { %v2057_v32 = vmul.f32 %v2715_v20, %v1935_v36  ;;  %v1958_v37 = vpop.f32.mrf.mxu0  ;;  %v2185_v25 = vperm.slane %v2177_v47, %v3144_v15 }
 0x2a6   : > { %v2175_v22 = vsel %vm324_vm0, %v2174_v57, %v2054_v2  ;;  %v2058_v13 = vmul.f32 %v2717_v38, %v1958_v37 }
 0x2a7   : > { %v2181_v53 = vperm.slane %v2175_v22, %v3144_v15  ;;  %v2186_v51 = vrot.slane %v2057_v32, 4 }
 0x2a8   : > { %v2200_v54 = vrot.slane %v2058_v13, 4 }
 0x2a9   : > { %v2224_v5 = vrot.slane %v2181_v53, 4 }
 0x2b3   : > { %v2027_v31 = vpop.f32.mrf.mxu3 }
 0x2b7   : > { %v1658_v14 = vpop.xlane.xlu2 %1657 }
 0x2b9   : > { %v1643_v59 = vpop.xlane.xlu0 %1642 }
 0x2ba   : > { %2718 = vrcp.f32 %v1643_v59 }
 0x2bb   : > { %2720 = vrcp.f32 %v1658_v14 }
 0x2bc   : > { %2722 = vrcp.f32 %v1661_v60 }
 0x2c0   : > { %v2719_v4 = vpop.eup %2718 }
 0x2c1   : > { %v1655_v18 = vpop.xlane.xlu0 %1654  ;;  %v2721_v28 = vpop.eup %2720 }
 0x2c2   : > { %v1889_v24 = vpop.f32.mrf.mxu1  ;;  %2724 = vrcp.f32 %v1655_v18  ;;  %v2723_v58 = vpop.eup %2722 }
 0x2c3   : > { %v2055_v19 = vmul.f32 %v2719_v4, %v1889_v24  ;;  %v2061_v49 = vmul.f32 %v2723_v58, %v2027_v31  ;;  %v2236_v24 = vrot.slane %v2185_v25, 4 }
 0x2c5   : > { %v2187_v43 = vsel %vm324_vm0, %v2186_v51, %v2055_v19  ;;  %v2188_v46 = vrot.slane %v2055_v19, 4  ;;  %v2210_v3 = vrot.slane %v2061_v49, 4 }
 0x2c6   : > { %v2004_v17 = vpop.f32.mrf.mxu2  ;;  %v2193_v45 = vperm.slane %v2187_v43, %v3144_v15 }
 0x2c7   : > { %v2060_v39 = vmul.f32 %v2721_v28, %v2004_v17  ;;  %v2189_v7 = vsel %vm324_vm0, %v2057_v32, %v2188_v46 }
 0x2c8   : > { %v2197_v33 = vperm.slane %v2189_v7, %v3144_v15  ;;  %v2222_v50 = vrot.slane %v2193_v45, 4  ;;  %v2225_v34 = vsel %vm324_vm0, %v2193_v45, %v2224_v5  ;;  %v2725_v61 = vpop.eup %2724 }
 0x2c9   : > { %v2198_v21 = vrot.slane %v2060_v39, 4  ;;  %v2201_v8 = vsel %vm324_vm0, %v2060_v39, %v2200_v54  ;;  %v2233_v55 = vperm.slane %v2225_v34, %v3161_v42 }
 0x2ca   : > { %v2234_v0 = vrot.slane %v2197_v33, 4  ;;  %v1981_v35 = vpop.f32.mrf.mxu1  ;;  %v2209_v56 = vperm.slane %v2201_v8, %v3144_v15  ;;  %v2223_v11 = vsel %vm324_vm0, %v2222_v50, %v2181_v53  ;;  %v2237_v31 = vsel %vm324_vm0, %v2197_v33, %v2236_v24 }
 0x2cb   : > { %v2199_v1 = vsel %vm324_vm0, %v2198_v21, %v2058_v13  ;;  %v2059_v29 = vmul.f32 %v2725_v61, %v1981_v35  ;;  %v2229_v30 = vperm.slane %v2223_v11, %v3161_v42  ;;  %v2276_v14 = vrot.slane %v2233_v55, 4 }
 0x2cc   : > { %v2205_v10 = vperm.slane %v2199_v1, %v3144_v15  ;;  %v2235_v16 = vsel %vm324_vm0, %v2234_v0, %v2185_v25  ;;  %v2260_v26 = vrot.slane %v2209_v56, 4  ;;  %v2245_v43 = vperm.slane %v2237_v31, %v3161_v42 }
 0x2cd   : > { %v2211_v27 = vsel %vm324_vm0, %v2210_v3, %v2059_v29  ;;  %v2212_v6 = vrot.slane %v2059_v29, 4  ;;  %v2241_v57 = vperm.slane %v2235_v16, %v3161_v42  ;;  %v2272_v37 = vrot.slane %v2229_v30, 4 }
 0x2ce   : > { %v2248_v9 = vrot.slane %v2205_v10, 4  ;;  %v2217_v52 = vperm.slane %v2211_v27, %v3144_v15  ;;  %v2284_v54 = vrot.slane %v2245_v43, 4 }
 0x2cf   : > { %v2213_v62 = vsel %vm324_vm0, %v2061_v49, %v2212_v6  ;;  %v2280_v22 = vrot.slane %v2241_v57, 4 }
 0x2d0   : > { %v2221_v63 = vperm.slane %v2213_v62, %v3144_v15  ;;  %v2246_v23 = vrot.slane %v2217_v52, 4  ;;  %v2249_v59 = vsel %vm324_vm0, %v2217_v52, %v2248_v9 }
 0x2d1   : > { %v2257_v36 = vperm.slane %v2249_v59, %v3161_v42 }
 0x2d2   : > { %v2258_v40 = vrot.slane %v2221_v63, 4  ;;  %v2247_v60 = vsel %vm324_vm0, %v2246_v23, %v2205_v10  ;;  %v2261_v20 = vsel %vm324_vm0, %v2221_v63, %v2260_v26 }
 0x2d3   : > { %v2277_v2 = vsel %vm324_vm0, %v2257_v36, %v2276_v14  ;;  %v2253_v32 = vperm.slane %v2247_v60, %v3161_v42  ;;  %v2269_v13 = vperm.slane %v2261_v20, %v3161_v42  ;;  %v2274_v46 = vrot.slane %v2257_v36, 4 }
 0x2d4   : > { %2306 = vrot.lane.b32.xlu1 %v2277_v2, %s2892_s22  ;;  %v2259_v15 = vsel %vm324_vm0, %v2258_v40, %v2209_v56 }
 0x2d5   : > { %v2273_v38 = vsel %vm324_vm0, %v2253_v32, %v2272_v37  ;;  %v2270_v18 = vrot.slane %v2253_v32, 4  ;;  %v2265_v4 = vperm.slane %v2259_v15, %v3161_v42  ;;  %v2282_v28 = vrot.slane %v2269_v13, 4 }
 0x2d6   : > { %2290 = vrot.lane.b32.xlu0 %v2273_v38, %s2891_s25  ;;  %v2275_v58 = vsel %vm324_vm0, %v2274_v46, %v2233_v55  ;;  %v2285_v45 = vsel %vm324_vm0, %v2269_v13, %v2284_v54 }
 0x2d7   : > { %v2281_v53 = vsel %vm324_vm0, %v2265_v4, %v2280_v22  ;;  %v2278_v51 = vrot.slane %v2265_v4, 4  ;;  %v2271_v19 = vsel %vm324_vm0, %v2270_v18, %v2229_v30  ;;  %v2283_v17 = vsel %vm324_vm0, %v2282_v28, %v2245_v43 }
 0x2d8   : > { %2314 = vrot.lane.b32.xlu2 %v2281_v53, %s2891_s25 }
 0x2d9   : > { %v2279_v41 = vsel %vm324_vm0, %v2278_v51, %v2241_v57 }
 0x2de   : > { %2322 = vrot.lane.b32.xlu0 %v2283_v17, %s2890_s17 }
 0x2e0   : > { %2298 = vrot.lane.b32.xlu2 %v2275_v58, %s2890_s17 }
 0x2e6   : > { %2328 = vrot.lane.b32.xlu0 %v3748_v12, %s2892_s22 }
 0x2e8   : > { %2330 = vrot.lane.b32.xlu2 %v2285_v45, %s2892_s22 }
 0x2f2   : > { %v2289_v39 = vpop.permute.xlu2 %2288 }
 0x2f3   : > { %v2334_v42 = vsel %vm1100_vm1, %v3763_v48, %v2289_v39 }
 0x2fa   : > { %v2305_v5 = vpop.permute.xlu2 %2304 }
 0x308   : > { %v2313_v12 = vpop.permute.xlu1 %2312 }
 0x309   : > { %v2342_v56 = vsel %vm1100_vm1, %v3757_v44, %v2313_v12 }
 0x30a   : > { %v2297_v47 = vpop.permute.xlu0 %2296 }
 0x30b   : > { %v2337_v49 = vsel %vm2336_vm3, %v2334_v42, %v2297_v47 }
 0x30c   : > { %v2340_v7 = vsel %vm2339_vm4, %v2337_v49, %v2305_v5 }
 0x30d   : > { %2348 = vst [vmem:[%s274_s8] sm:$0xff] %v2340_v7 }
 0x310   : > { %v2321_v50 = vpop.permute.xlu1 %2320 }
 0x311   : > { %v2344_v29 = vsel %vm2336_vm3, %v2342_v56, %v2321_v50 }
 0x332   : > { %v2315_v33 = vpop.permute.xlu2 %2314 }
 0x333   : > { %v2343_v0 = vsel %vm1100_vm1, %v2279_v41, %v2315_v33 }
 0x33a   : > { %v2299_v21 = vpop.permute.xlu2 %2298 }
 0x342   : > { %v2331_v35 = vpop.permute.xlu2 %2330 }
 0x346   : > { %v2307_v61 = vpop.permute.xlu1 %2306 }
 0x348   : > { %v2291_v8 = vpop.permute.xlu0 %2290 }
 0x349   : > { %v2335_v34 = vsel %vm1100_vm1, %v2271_v19, %v2291_v8 }
 0x34a   : > { %v2338_v25 = vsel %vm2336_vm3, %v2335_v34, %v2299_v21 }
 0x34b   : > { %v2341_v48 = vsel %vm2339_vm4, %v2338_v25, %v2307_v61 }
 0x34c   : > { %2350 = vst [vmem:[%s274_s8 + $0x10] sm:$0xff] %v2341_v48 }
 0x350   : > { %v2323_v1 = vpop.permute.xlu0 %2322 }
 0x351   : > { %v2345_v3 = vsel %vm2336_vm3, %v2343_v0, %v2323_v1 }
 0x352   : > { %v2347_v10 = vsel %vm2339_vm4, %v2345_v3, %v2331_v35 }
 0x353   : > { %2351 = vst [vmem:[%s274_s8 + $0x18] sm:$0xff] %v2347_v10 }
 0x358   : > { %v2329_v55 = vpop.permute.xlu0 %2328 }
 0x359   : > { %v2346_v11 = vsel %vm2339_vm4, %v2344_v29, %v2329_v55 }
 0x35a   : > { %2349 = vst [vmem:[%s274_s8 + $0x8] sm:$0xff] %v2346_v11 }
 0x35b   : > { %2843 = shalt.err (!%p2840_p7)
}
 0x35c   : > { %s2895_s0 = smov 256   ;;  %s2896_s9 = smov 16  }
 0x35d   : > { %2573 = dma.vmem_to_hbm [thread:$0]  (%p2963_p11), %s2367_s10, 512, %s2369_s11, %s2353_s16, %s2895_s0, %s2895_s0, %s2896_s9  }
 0x35e PF: > { %s2383_s5 = sand.u32 1, %s2874_s12   ;;  %p2586_p0 = pnand %p2487_p9, %p2967_p12 }
 0x35f   : > { %s2384_s17 = scalar_lea.sflag [#allocation4], %s2383_s5 }
 0x360   : > { %p2587_p8 = pneg %p2586_p0 }
 0x362   : > { %2869 = dma.done.wait (%p2587_p8), %s2384_s17, 512  }
 0x363   : > { %2871 = vsyncadd (%p2587_p8), %s2384_s17, 4294966784  ;;  %s3882_s25 = sld [smem:[#allocation12_spill]]  ;;  %p19_p10 = scmp.ge.s32.totalorder %s2942_s18, 4  }
 0x364   : > { %s3883_s12 = smov %s2878_s13  ;;  %s3884_s13 = smov %s2882_s14 }
 0x365   : > { %s3886_s15 = smov %s2942_s18  ;;  %21 = sbr.rel (!%p19_p10) target bundleno = 10 (0xa), region = 101 }
 0x369   : > { %s3885_s14 = smov %s3882_s25 }
 0x36a   :  { %2390 = vsyncpa [#allocation3], 1 }
 0x36b   :  { %2392 = vsyncpa [#allocation3 + $0x1], 1 }
 0x36c   :  { %2393 = vsyncpa [#allocation6], 1 }
 0x36d   :  { %2395 = vsyncpa [#allocation6 + $0x1], 1 }
 0x36e   :  { %2396 = vsyncpa [#allocation4], 1 }
 0x36f   :  { %2398 = vsyncpa [#allocation4 + $0x1], 1 }

</bundles_post_ra>
